<compile_context>
chip_gen: v6e
topology: v6e:2x2x1
jax: 0.10.0
libtpu: 0.0.40
codegen_flags: <defaults>
</compile_context>

<pallas_src>
import jax
import jax.numpy as jnp
from jax.experimental import pallas as pl
from jax.experimental.pallas import tpu as pltpu


def _make_fused_kernel(channels, hw, eps):
    """Build the fused multi-layer kernel.

    Kernel ref layout: [g0, b0, w0, g1, b1, w1, ..., x_ref, o_ref]
      g_i, b_i : (1, C_i*HW)      VMEM (elementwise LayerNorm affine)
      w_i      : (C_{i+1}*C_i,)   SMEM (1x1-conv weight, flattened, scalar reads)
      x_ref    : (B, C_0*HW)      VMEM
      o_ref    : (B, C_L*HW)      VMEM
    """
    num_layers = len(channels) - 1

    def kernel(*refs):
        x_ref = refs[3 * num_layers]
        o_ref = refs[3 * num_layers + 1]

        h = x_ref[...].astype(jnp.float32)                           # (B, C0*HW)

        for i in range(num_layers):
            g_ref = refs[3 * i]
            b_ref = refs[3 * i + 1]
            w_ref = refs[3 * i + 2]
            cin = channels[i]
            cout = channels[i + 1]

            # ---- LayerNorm over the (C*HW) row: two-pass, stable ----
            cnt = jnp.float32(cin * hw)
            mean = jnp.sum(h, axis=-1, keepdims=True) / cnt          # (B, 1)
            hc = h - mean
            var = jnp.sum(hc * hc, axis=-1, keepdims=True) / cnt     # (B, 1)
            hn = hc * jax.lax.rsqrt(var + eps)
            hn = hn * g_ref[...] + b_ref[...]                        # (B, Cin*HW)

            # ---- 1x1 conv (no bias): VPU channel mix on lane slices ----
            # HW is a multiple of 128, so these are free 128-aligned lane
            # slices (no relayout).  Hoisted out of the output-channel loop.
            cols = [hn[:, c * hw:(c + 1) * hw] for c in range(cin)]  # (B, HW)
            outs = []
            for o in range(cout):
                acc = w_ref[o * cin + 0] * cols[0]
                for c in range(1, cin):
                    acc = acc + w_ref[o * cin + c] * cols[c]
                outs.append(acc)
            y = jnp.concatenate(outs, axis=-1)                       # (B, Cout*HW)

            # ---- Softplus on all but the last layer (stable form, EUP) ----
            if i < num_layers - 1:
                y = jnp.maximum(y, 0.0) + jnp.log1p(jnp.exp(-jnp.abs(y)))

            h = y

        o_ref[...] = h.astype(o_ref.dtype)

    return kernel


def _num_tensorcores_per_chip():
    """2 for v7x (2 TC/chip), 1 for v5e/v6e; conservative fallback 1."""
    try:
        kind = jax.devices()[0].device_kind.lower()
        if "v7" in kind:
            return 2
    except Exception:
        pass
    return 1


def _pick_samples_per_step(n, channels, hw):
    """Samples per grid step: multiple of 8 (fills sublanes), sized from a
    conservative VMEM budget that fits all generations (v7x has only 64 MiB);
    on 2-TC chips keep >= 2 grid steps so both TensorCores get work."""
    c0, cl, cmax = channels[0], channels[-1], max(channels)
    # Per-sample f32 VMEM: double-buffered input+output blocks plus ~4 live
    # full-size activation temporaries inside the fused body.
    bytes_per_sample = (2 * c0 + 2 * cl + 4 * cmax) * hw * 4
    budget = 16 << 20
    b = max(8, (budget // max(bytes_per_sample, 1)) // 8 * 8)

    n_pad_min = ((n + 7) // 8) * 8
    if _num_tensorcores_per_chip() >= 2 and n_pad_min > 8:
        half = ((n + 1) // 2 + 7) // 8 * 8
        b = min(b, half)
    return min(b, n_pad_min)


def cnn1x1_forward(x, params, *, eps=1e-5):
    """x: (N, C0, H, W) NCHW.  params: list of (gamma, beta, weight) per layer
    with gamma/beta shaped (C_i, H, W) and weight shaped (C_{i+1}, C_i)."""
    N, C0, H, W = x.shape
    HW = H * W
    channels = [C0] + [w.shape[0] for (_, _, w) in params]
    CL = channels[-1]

    B = _pick_samples_per_step(N, channels, HW)
    n_pad = pl.cdiv(N, B) * B
    grid = (n_pad // B,)

    x2 = x.reshape(N, C0 * HW)
    if n_pad != N:
        # Zero padding is safe: padded rows produce finite values and are
        # sliced off below.
        x2 = jnp.pad(x2, ((0, n_pad - N), (0, 0)))

    inputs = []
    in_specs = []
    for (gamma, beta, w) in params:
        cin = gamma.shape[0]
        # Full-array blocks with constant index_map -> stay VMEM-resident.
        inputs.append(gamma.reshape(1, cin * HW))
        in_specs.append(pl.BlockSpec((1, cin * HW), lambda n: (0, 0)))
        inputs.append(beta.reshape(1, cin * HW))
        in_specs.append(pl.BlockSpec((1, cin * HW), lambda n: (0, 0)))
        inputs.append(w.reshape(-1).astype(jnp.float32))             # SMEM scalars
        in_specs.append(pl.BlockSpec(memory_space=pltpu.MemorySpace.SMEM))

    inputs.append(x2)
    in_specs.append(pl.BlockSpec((B, C0 * HW), lambda n: (n, 0)))

    kernel = _make_fused_kernel(channels, HW, eps)

    out = pl.pallas_call(
        kernel,
        out_shape=jax.ShapeDtypeStruct((n_pad, CL * HW), x.dtype),
        grid=grid,
        in_specs=in_specs,
        out_specs=pl.BlockSpec((B, CL * HW), lambda n: (n, 0)),
        compiler_params=pltpu.CompilerParams(
            dimension_semantics=("parallel",),
            # Explicit scoped-VMEM limit: safe on v5e/v6e (128 MiB physical,
            # raises the 16 MiB v5e default) and within v7x's 64 MiB.
            vmem_limit_bytes=32 * 1024 * 1024,
        ),
    )(*inputs)

    return out[:N].reshape(N, CL, H, W)


def _ref_forward(x, params, *, eps=1e-5):
    """Pure-JAX reference of the PyTorch forward (identity act_fn)."""
    h = x
    L = len(params)
    for i, (gamma, beta, w) in enumerate(params):
        mean = h.mean(axis=(1, 2, 3), keepdims=True)
        var = ((h - mean) ** 2).mean(axis=(1, 2, 3), keepdims=True)
        hn = (h - mean) / jnp.sqrt(var + eps)
        hn = hn * gamma[None] + beta[None]
        y = jnp.einsum("oc,nchw->nohw", w, hn)
        if i < L - 1:
            y = jax.nn.softplus(y)
        h = y
    return h


def init_params(key, channels, patch_size):
    """Deterministic synthetic parameters.
    LayerNorm: gamma/beta of shape (C_i, H, W); Conv2d 1x1: weight (C_{i+1}, C_i)."""
    H, W = patch_size
    params = []
    for i in range(len(channels) - 1):
        key, k1, k2, k3 = jax.random.split(key, 4)
        cin, cout = channels[i], channels[i + 1]
        gamma = 1.0 + 0.1 * jax.random.normal(k1, (cin, H, W), jnp.float32)
        beta = 0.1 * jax.random.normal(k2, (cin, H, W), jnp.float32)
        weight = jax.random.normal(k3, (cout, cin), jnp.float32) * (1.0 / cin) ** 0.5
        params.append((gamma, beta, weight))
    return params


if __name__ == "__main__":
    patch_size = (16, 16)
    channels = (4, 8, 4)      # two layers: LN->conv->softplus, LN->conv
    batch = 2

    key = jax.random.PRNGKey(0)
    kx, kp = jax.random.split(key)
    x = jax.random.normal(kx, (batch, channels[0], *patch_size), jnp.float32)
    params = init_params(kp, channels, patch_size)

    out = cnn1x1_forward(x, params)
    out = jax.block_until_ready(out)

    ref = _ref_forward(x, params)
    assert out.shape == (batch, channels[-1], *patch_size), out.shape
    assert jnp.allclose(out, ref, atol=1e-4, rtol=1e-4), "mismatch vs reference"

    print("KERNEL_OK")
</pallas_src>

<mosaic_0001>
module attributes {stable_mosaic.version = 11 : i64} {
  func.func @kernel(%arg0: i32, %arg1: memref<1x1024xf32, #tpu.memory_space<vmem>>, %arg2: memref<1x1024xf32, #tpu.memory_space<vmem>>, %arg3: memref<32xf32, #tpu.memory_space<smem>>, %arg4: memref<1x2048xf32, #tpu.memory_space<vmem>>, %arg5: memref<1x2048xf32, #tpu.memory_space<vmem>>, %arg6: memref<32xf32, #tpu.memory_space<smem>>, %arg7: memref<8x1024xf32, #tpu.memory_space<vmem>>, %arg8: memref<8x1024xf32, #tpu.memory_space<vmem>>) attributes {dimension_semantics = [#tpu.dimension_semantics<parallel>], iteration_bounds = array<i64: 1>, scalar_prefetch = 0 : i64, scratch_operands = 0 : i64, tpu.core_type = #tpu.core_type<tc>, window_params = [{pipeline_mode = #tpu.pipeline_mode<synchronous>, transform_indices = @transform_0, window_bounds = array<i64: 1, 1024>}, {pipeline_mode = #tpu.pipeline_mode<synchronous>, transform_indices = @transform_1, window_bounds = array<i64: 1, 1024>}, {transform_indices = @transform_2, window_bounds = array<i64: 32>}, {pipeline_mode = #tpu.pipeline_mode<synchronous>, transform_indices = @transform_3, window_bounds = array<i64: 1, 2048>}, {pipeline_mode = #tpu.pipeline_mode<synchronous>, transform_indices = @transform_4, window_bounds = array<i64: 1, 2048>}, {transform_indices = @transform_5, window_bounds = array<i64: 32>}, {transform_indices = @transform_6, window_bounds = array<i64: 8, 1024>}, {transform_indices = @transform_7, window_bounds = array<i64: 8, 1024>}]} {
    %c0 = arith.constant 0 : index
    %c0_0 = arith.constant 0 : index
    %0 = vector.load %arg7[%c0, %c0_0] : memref<8x1024xf32, #tpu.memory_space<vmem>>, vector<8x1024xf32>
    %cst = arith.constant dense<0.000000e+00> : vector<8xf32>
    %1 = vector.multi_reduction <add>, %0, %cst [1] : vector<8x1024xf32> to vector<8xf32>
    %2 = vector.shape_cast %1 : vector<8xf32> to vector<8x1xf32>
    %cst_1 = arith.constant 1.024000e+03 : f32
    %3 = vector.broadcast %cst_1 : f32 to vector<8x1xf32>
    %4 = arith.divf %2, %3 : vector<8x1xf32>
    %5 = vector.broadcast %4 : vector<8x1xf32> to vector<8x1024xf32>
    %6 = arith.subf %0, %5 : vector<8x1024xf32>
    %7 = arith.mulf %6, %6 : vector<8x1024xf32>
    %cst_2 = arith.constant dense<0.000000e+00> : vector<8xf32>
    %8 = vector.multi_reduction <add>, %7, %cst_2 [1] : vector<8x1024xf32> to vector<8xf32>
    %9 = vector.shape_cast %8 : vector<8xf32> to vector<8x1xf32>
    %cst_3 = arith.constant 1.024000e+03 : f32
    %10 = vector.broadcast %cst_3 : f32 to vector<8x1xf32>
    %11 = arith.divf %9, %10 : vector<8x1xf32>
    %cst_4 = arith.constant 9.99999974E-6 : f32
    %12 = vector.broadcast %cst_4 : f32 to vector<8x1xf32>
    %13 = arith.addf %11, %12 : vector<8x1xf32>
    %14 = math.rsqrt %13 : vector<8x1xf32>
    %15 = vector.broadcast %14 : vector<8x1xf32> to vector<8x1024xf32>
    %16 = arith.mulf %6, %15 : vector<8x1024xf32>
    %c0_5 = arith.constant 0 : index
    %c0_6 = arith.constant 0 : index
    %17 = vector.load %arg1[%c0_5, %c0_6] : memref<1x1024xf32, #tpu.memory_space<vmem>>, vector<1x1024xf32>
    %18 = vector.broadcast %17 : vector<1x1024xf32> to vector<8x1024xf32>
    %19 = arith.mulf %16, %18 : vector<8x1024xf32>
    %c0_7 = arith.constant 0 : index
    %c0_8 = arith.constant 0 : index
    %20 = vector.load %arg2[%c0_7, %c0_8] : memref<1x1024xf32, #tpu.memory_space<vmem>>, vector<1x1024xf32>
    %21 = vector.broadcast %20 : vector<1x1024xf32> to vector<8x1024xf32>
    %22 = arith.addf %19, %21 : vector<8x1024xf32>
    %23 = vector.extract_strided_slice %22 {offsets = [0, 0], sizes = [8, 256], strides = [1, 1]} : vector<8x1024xf32> to vector<8x256xf32>
    %24 = vector.extract_strided_slice %22 {offsets = [0, 256], sizes = [8, 256], strides = [1, 1]} : vector<8x1024xf32> to vector<8x256xf32>
    %25 = vector.extract_strided_slice %22 {offsets = [0, 512], sizes = [8, 256], strides = [1, 1]} : vector<8x1024xf32> to vector<8x256xf32>
    %26 = vector.extract_strided_slice %22 {offsets = [0, 768], sizes = [8, 256], strides = [1, 1]} : vector<8x1024xf32> to vector<8x256xf32>
    %c0_9 = arith.constant 0 : index
    %27 = memref.load %arg3[%c0_9] : memref<32xf32, #tpu.memory_space<smem>>
    %28 = vector.broadcast %27 : f32 to vector<8x256xf32>
    %29 = arith.mulf %28, %23 : vector<8x256xf32>
    %c1 = arith.constant 1 : index
    %30 = memref.load %arg3[%c1] : memref<32xf32, #tpu.memory_space<smem>>
    %31 = vector.broadcast %30 : f32 to vector<8x256xf32>
    %32 = arith.mulf %31, %24 : vector<8x256xf32>
    %33 = arith.addf %29, %32 : vector<8x256xf32>
    %c2 = arith.constant 2 : index
    %34 = memref.load %arg3[%c2] : memref<32xf32, #tpu.memory_space<smem>>
    %35 = vector.broadcast %34 : f32 to vector<8x256xf32>
    %36 = arith.mulf %35, %25 : vector<8x256xf32>
    %37 = arith.addf %33, %36 : vector<8x256xf32>
    %c3 = arith.constant 3 : index
    %38 = memref.load %arg3[%c3] : memref<32xf32, #tpu.memory_space<smem>>
    %39 = vector.broadcast %38 : f32 to vector<8x256xf32>
    %40 = arith.mulf %39, %26 : vector<8x256xf32>
    %41 = arith.addf %37, %40 : vector<8x256xf32>
    %c4 = arith.constant 4 : index
    %42 = memref.load %arg3[%c4] : memref<32xf32, #tpu.memory_space<smem>>
    %43 = vector.broadcast %42 : f32 to vector<8x256xf32>
    %44 = arith.mulf %43, %23 : vector<8x256xf32>
    %c5 = arith.constant 5 : index
    %45 = memref.load %arg3[%c5] : memref<32xf32, #tpu.memory_space<smem>>
    %46 = vector.broadcast %45 : f32 to vector<8x256xf32>
    %47 = arith.mulf %46, %24 : vector<8x256xf32>
    %48 = arith.addf %44, %47 : vector<8x256xf32>
    %c6 = arith.constant 6 : index
    %49 = memref.load %arg3[%c6] : memref<32xf32, #tpu.memory_space<smem>>
    %50 = vector.broadcast %49 : f32 to vector<8x256xf32>
    %51 = arith.mulf %50, %25 : vector<8x256xf32>
    %52 = arith.addf %48, %51 : vector<8x256xf32>
    %c7 = arith.constant 7 : index
    %53 = memref.load %arg3[%c7] : memref<32xf32, #tpu.memory_space<smem>>
    %54 = vector.broadcast %53 : f32 to vector<8x256xf32>
    %55 = arith.mulf %54, %26 : vector<8x256xf32>
    %56 = arith.addf %52, %55 : vector<8x256xf32>
    %c8 = arith.constant 8 : index
    %57 = memref.load %arg3[%c8] : memref<32xf32, #tpu.memory_space<smem>>
    %58 = vector.broadcast %57 : f32 to vector<8x256xf32>
    %59 = arith.mulf %58, %23 : vector<8x256xf32>
    %c9 = arith.constant 9 : index
    %60 = memref.load %arg3[%c9] : memref<32xf32, #tpu.memory_space<smem>>
    %61 = vector.broadcast %60 : f32 to vector<8x256xf32>
    %62 = arith.mulf %61, %24 : vector<8x256xf32>
    %63 = arith.addf %59, %62 : vector<8x256xf32>
    %c10 = arith.constant 10 : index
    %64 = memref.load %arg3[%c10] : memref<32xf32, #tpu.memory_space<smem>>
    %65 = vector.broadcast %64 : f32 to vector<8x256xf32>
    %66 = arith.mulf %65, %25 : vector<8x256xf32>
    %67 = arith.addf %63, %66 : vector<8x256xf32>
    %c11 = arith.constant 11 : index
    %68 = memref.load %arg3[%c11] : memref<32xf32, #tpu.memory_space<smem>>
    %69 = vector.broadcast %68 : f32 to vector<8x256xf32>
    %70 = arith.mulf %69, %26 : vector<8x256xf32>
    %71 = arith.addf %67, %70 : vector<8x256xf32>
    %c12 = arith.constant 12 : index
    %72 = memref.load %arg3[%c12] : memref<32xf32, #tpu.memory_space<smem>>
    %73 = vector.broadcast %72 : f32 to vector<8x256xf32>
    %74 = arith.mulf %73, %23 : vector<8x256xf32>
    %c13 = arith.constant 13 : index
    %75 = memref.load %arg3[%c13] : memref<32xf32, #tpu.memory_space<smem>>
    %76 = vector.broadcast %75 : f32 to vector<8x256xf32>
    %77 = arith.mulf %76, %24 : vector<8x256xf32>
    %78 = arith.addf %74, %77 : vector<8x256xf32>
    %c14 = arith.constant 14 : index
    %79 = memref.load %arg3[%c14] : memref<32xf32, #tpu.memory_space<smem>>
    %80 = vector.broadcast %79 : f32 to vector<8x256xf32>
    %81 = arith.mulf %80, %25 : vector<8x256xf32>
    %82 = arith.addf %78, %81 : vector<8x256xf32>
    %c15 = arith.constant 15 : index
    %83 = memref.load %arg3[%c15] : memref<32xf32, #tpu.memory_space<smem>>
    %84 = vector.broadcast %83 : f32 to vector<8x256xf32>
    %85 = arith.mulf %84, %26 : vector<8x256xf32>
    %86 = arith.addf %82, %85 : vector<8x256xf32>
    %c16 = arith.constant 16 : index
    %87 = memref.load %arg3[%c16] : memref<32xf32, #tpu.memory_space<smem>>
    %88 = vector.broadcast %87 : f32 to vector<8x256xf32>
    %89 = arith.mulf %88, %23 : vector<8x256xf32>
    %c17 = arith.constant 17 : index
    %90 = memref.load %arg3[%c17] : memref<32xf32, #tpu.memory_space<smem>>
    %91 = vector.broadcast %90 : f32 to vector<8x256xf32>
    %92 = arith.mulf %91, %24 : vector<8x256xf32>
    %93 = arith.addf %89, %92 : vector<8x256xf32>
    %c18 = arith.constant 18 : index
    %94 = memref.load %arg3[%c18] : memref<32xf32, #tpu.memory_space<smem>>
    %95 = vector.broadcast %94 : f32 to vector<8x256xf32>
    %96 = arith.mulf %95, %25 : vector<8x256xf32>
    %97 = arith.addf %93, %96 : vector<8x256xf32>
    %c19 = arith.constant 19 : index
    %98 = memref.load %arg3[%c19] : memref<32xf32, #tpu.memory_space<smem>>
    %99 = vector.broadcast %98 : f32 to vector<8x256xf32>
    %100 = arith.mulf %99, %26 : vector<8x256xf32>
    %101 = arith.addf %97, %100 : vector<8x256xf32>
    %c20 = arith.constant 20 : index
    %102 = memref.load %arg3[%c20] : memref<32xf32, #tpu.memory_space<smem>>
    %103 = vector.broadcast %102 : f32 to vector<8x256xf32>
    %104 = arith.mulf %103, %23 : vector<8x256xf32>
    %c21 = arith.constant 21 : index
    %105 = memref.load %arg3[%c21] : memref<32xf32, #tpu.memory_space<smem>>
    %106 = vector.broadcast %105 : f32 to vector<8x256xf32>
    %107 = arith.mulf %106, %24 : vector<8x256xf32>
    %108 = arith.addf %104, %107 : vector<8x256xf32>
    %c22 = arith.constant 22 : index
    %109 = memref.load %arg3[%c22] : memref<32xf32, #tpu.memory_space<smem>>
    %110 = vector.broadcast %109 : f32 to vector<8x256xf32>
    %111 = arith.mulf %110, %25 : vector<8x256xf32>
    %112 = arith.addf %108, %111 : vector<8x256xf32>
    %c23 = arith.constant 23 : index
    %113 = memref.load %arg3[%c23] : memref<32xf32, #tpu.memory_space<smem>>
    %114 = vector.broadcast %113 : f32 to vector<8x256xf32>
    %115 = arith.mulf %114, %26 : vector<8x256xf32>
    %116 = arith.addf %112, %115 : vector<8x256xf32>
    %c24 = arith.constant 24 : index
    %117 = memref.load %arg3[%c24] : memref<32xf32, #tpu.memory_space<smem>>
    %118 = vector.broadcast %117 : f32 to vector<8x256xf32>
    %119 = arith.mulf %118, %23 : vector<8x256xf32>
    %c25 = arith.constant 25 : index
    %120 = memref.load %arg3[%c25] : memref<32xf32, #tpu.memory_space<smem>>
    %121 = vector.broadcast %120 : f32 to vector<8x256xf32>
    %122 = arith.mulf %121, %24 : vector<8x256xf32>
    %123 = arith.addf %119, %122 : vector<8x256xf32>
    %c26 = arith.constant 26 : index
    %124 = memref.load %arg3[%c26] : memref<32xf32, #tpu.memory_space<smem>>
    %125 = vector.broadcast %124 : f32 to vector<8x256xf32>
    %126 = arith.mulf %125, %25 : vector<8x256xf32>
    %127 = arith.addf %123, %126 : vector<8x256xf32>
    %c27 = arith.constant 27 : index
    %128 = memref.load %arg3[%c27] : memref<32xf32, #tpu.memory_space<smem>>
    %129 = vector.broadcast %128 : f32 to vector<8x256xf32>
    %130 = arith.mulf %129, %26 : vector<8x256xf32>
    %131 = arith.addf %127, %130 : vector<8x256xf32>
    %c28 = arith.constant 28 : index
    %132 = memref.load %arg3[%c28] : memref<32xf32, #tpu.memory_space<smem>>
    %133 = vector.broadcast %132 : f32 to vector<8x256xf32>
    %134 = arith.mulf %133, %23 : vector<8x256xf32>
    %c29 = arith.constant 29 : index
    %135 = memref.load %arg3[%c29] : memref<32xf32, #tpu.memory_space<smem>>
    %136 = vector.broadcast %135 : f32 to vector<8x256xf32>
    %137 = arith.mulf %136, %24 : vector<8x256xf32>
    %138 = arith.addf %134, %137 : vector<8x256xf32>
    %c30 = arith.constant 30 : index
    %139 = memref.load %arg3[%c30] : memref<32xf32, #tpu.memory_space<smem>>
    %140 = vector.broadcast %139 : f32 to vector<8x256xf32>
    %141 = arith.mulf %140, %25 : vector<8x256xf32>
    %142 = arith.addf %138, %141 : vector<8x256xf32>
    %c31 = arith.constant 31 : index
    %143 = memref.load %arg3[%c31] : memref<32xf32, #tpu.memory_space<smem>>
    %144 = vector.broadcast %143 : f32 to vector<8x256xf32>
    %145 = arith.mulf %144, %26 : vector<8x256xf32>
    %146 = arith.addf %142, %145 : vector<8x256xf32>
    %147 = tpu.concatenate %41, %56, %71, %86, %101, %116, %131, %146 in 1 : vector<8x256xf32>, vector<8x256xf32>, vector<8x256xf32>, vector<8x256xf32>, vector<8x256xf32>, vector<8x256xf32>, vector<8x256xf32>, vector<8x256xf32> -> vector<8x2048xf32>
    %cst_10 = arith.constant 0.000000e+00 : f32
    %148 = vector.broadcast %cst_10 : f32 to vector<8x2048xf32>
    %149 = arith.maximumf %147, %148 : vector<8x2048xf32>
    %150 = math.absf %147 : vector<8x2048xf32>
    %cst_11 = arith.constant 0.000000e+00 : f32
    %151 = vector.broadcast %cst_11 : f32 to vector<8x2048xf32>
    %152 = arith.subf %151, %150 : vector<8x2048xf32>
    %153 = math.exp %152 : vector<8x2048xf32>
    %154 = math.log1p %153 : vector<8x2048xf32>
    %155 = arith.addf %149, %154 : vector<8x2048xf32>
    %cst_12 = arith.constant dense<0.000000e+00> : vector<8xf32>
    %156 = vector.multi_reduction <add>, %155, %cst_12 [1] : vector<8x2048xf32> to vector<8xf32>
    %157 = vector.shape_cast %156 : vector<8xf32> to vector<8x1xf32>
    %cst_13 = arith.constant 2.048000e+03 : f32
    %158 = vector.broadcast %cst_13 : f32 to vector<8x1xf32>
    %159 = arith.divf %157, %158 : vector<8x1xf32>
    %160 = vector.broadcast %159 : vector<8x1xf32> to vector<8x2048xf32>
    %161 = arith.subf %155, %160 : vector<8x2048xf32>
    %162 = arith.mulf %161, %161 : vector<8x2048xf32>
    %cst_14 = arith.constant dense<0.000000e+00> : vector<8xf32>
    %163 = vector.multi_reduction <add>, %162, %cst_14 [1] : vector<8x2048xf32> to vector<8xf32>
    %164 = vector.shape_cast %163 : vector<8xf32> to vector<8x1xf32>
    %cst_15 = arith.constant 2.048000e+03 : f32
    %165 = vector.broadcast %cst_15 : f32 to vector<8x1xf32>
    %166 = arith.divf %164, %165 : vector<8x1xf32>
    %cst_16 = arith.constant 9.99999974E-6 : f32
    %167 = vector.broadcast %cst_16 : f32 to vector<8x1xf32>
    %168 = arith.addf %166, %167 : vector<8x1xf32>
    %169 = math.rsqrt %168 : vector<8x1xf32>
    %170 = vector.broadcast %169 : vector<8x1xf32> to vector<8x2048xf32>
    %171 = arith.mulf %161, %170 : vector<8x2048xf32>
    %c0_17 = arith.constant 0 : index
    %c0_18 = arith.constant 0 : index
    %172 = vector.load %arg4[%c0_17, %c0_18] : memref<1x2048xf32, #tpu.memory_space<vmem>>, vector<1x2048xf32>
    %173 = vector.broadcast %172 : vector<1x2048xf32> to vector<8x2048xf32>
    %174 = arith.mulf %171, %173 : vector<8x2048xf32>
    %c0_19 = arith.constant 0 : index
    %c0_20 = arith.constant 0 : index
    %175 = vector.load %arg5[%c0_19, %c0_20] : memref<1x2048xf32, #tpu.memory_space<vmem>>, vector<1x2048xf32>
    %176 = vector.broadcast %175 : vector<1x2048xf32> to vector<8x2048xf32>
    %177 = arith.addf %174, %176 : vector<8x2048xf32>
    %178 = vector.extract_strided_slice %177 {offsets = [0, 0], sizes = [8, 256], strides = [1, 1]} : vector<8x2048xf32> to vector<8x256xf32>
    %179 = vector.extract_strided_slice %177 {offsets = [0, 256], sizes = [8, 256], strides = [1, 1]} : vector<8x2048xf32> to vector<8x256xf32>
    %180 = vector.extract_strided_slice %177 {offsets = [0, 512], sizes = [8, 256], strides = [1, 1]} : vector<8x2048xf32> to vector<8x256xf32>
    %181 = vector.extract_strided_slice %177 {offsets = [0, 768], sizes = [8, 256], strides = [1, 1]} : vector<8x2048xf32> to vector<8x256xf32>
    %182 = vector.extract_strided_slice %177 {offsets = [0, 1024], sizes = [8, 256], strides = [1, 1]} : vector<8x2048xf32> to vector<8x256xf32>
    %183 = vector.extract_strided_slice %177 {offsets = [0, 1280], sizes = [8, 256], strides = [1, 1]} : vector<8x2048xf32> to vector<8x256xf32>
    %184 = vector.extract_strided_slice %177 {offsets = [0, 1536], sizes = [8, 256], strides = [1, 1]} : vector<8x2048xf32> to vector<8x256xf32>
    %185 = vector.extract_strided_slice %177 {offsets = [0, 1792], sizes = [8, 256], strides = [1, 1]} : vector<8x2048xf32> to vector<8x256xf32>
    %c0_21 = arith.constant 0 : index
    %186 = memref.load %arg6[%c0_21] : memref<32xf32, #tpu.memory_space<smem>>
    %187 = vector.broadcast %186 : f32 to vector<8x256xf32>
    %188 = arith.mulf %187, %178 : vector<8x256xf32>
    %c1_22 = arith.constant 1 : index
    %189 = memref.load %arg6[%c1_22] : memref<32xf32, #tpu.memory_space<smem>>
    %190 = vector.broadcast %189 : f32 to vector<8x256xf32>
    %191 = arith.mulf %190, %179 : vector<8x256xf32>
    %192 = arith.addf %188, %191 : vector<8x256xf32>
    %c2_23 = arith.constant 2 : index
    %193 = memref.load %arg6[%c2_23] : memref<32xf32, #tpu.memory_space<smem>>
    %194 = vector.broadcast %193 : f32 to vector<8x256xf32>
    %195 = arith.mulf %194, %180 : vector<8x256xf32>
    %196 = arith.addf %192, %195 : vector<8x256xf32>
    %c3_24 = arith.constant 3 : index
    %197 = memref.load %arg6[%c3_24] : memref<32xf32, #tpu.memory_space<smem>>
    %198 = vector.broadcast %197 : f32 to vector<8x256xf32>
    %199 = arith.mulf %198, %181 : vector<8x256xf32>
    %200 = arith.addf %196, %199 : vector<8x256xf32>
    %c4_25 = arith.constant 4 : index
    %201 = memref.load %arg6[%c4_25] : memref<32xf32, #tpu.memory_space<smem>>
    %202 = vector.broadcast %201 : f32 to vector<8x256xf32>
    %203 = arith.mulf %202, %182 : vector<8x256xf32>
    %204 = arith.addf %200, %203 : vector<8x256xf32>
    %c5_26 = arith.constant 5 : index
    %205 = memref.load %arg6[%c5_26] : memref<32xf32, #tpu.memory_space<smem>>
    %206 = vector.broadcast %205 : f32 to vector<8x256xf32>
    %207 = arith.mulf %206, %183 : vector<8x256xf32>
    %208 = arith.addf %204, %207 : vector<8x256xf32>
    %c6_27 = arith.constant 6 : index
    %209 = memref.load %arg6[%c6_27] : memref<32xf32, #tpu.memory_space<smem>>
    %210 = vector.broadcast %209 : f32 to vector<8x256xf32>
    %211 = arith.mulf %210, %184 : vector<8x256xf32>
    %212 = arith.addf %208, %211 : vector<8x256xf32>
    %c7_28 = arith.constant 7 : index
    %213 = memref.load %arg6[%c7_28] : memref<32xf32, #tpu.memory_space<smem>>
    %214 = vector.broadcast %213 : f32 to vector<8x256xf32>
    %215 = arith.mulf %214, %185 : vector<8x256xf32>
    %216 = arith.addf %212, %215 : vector<8x256xf32>
    %c8_29 = arith.constant 8 : index
    %217 = memref.load %arg6[%c8_29] : memref<32xf32, #tpu.memory_space<smem>>
    %218 = vector.broadcast %217 : f32 to vector<8x256xf32>
    %219 = arith.mulf %218, %178 : vector<8x256xf32>
    %c9_30 = arith.constant 9 : index
    %220 = memref.load %arg6[%c9_30] : memref<32xf32, #tpu.memory_space<smem>>
    %221 = vector.broadcast %220 : f32 to vector<8x256xf32>
    %222 = arith.mulf %221, %179 : vector<8x256xf32>
    %223 = arith.addf %219, %222 : vector<8x256xf32>
    %c10_31 = arith.constant 10 : index
    %224 = memref.load %arg6[%c10_31] : memref<32xf32, #tpu.memory_space<smem>>
    %225 = vector.broadcast %224 : f32 to vector<8x256xf32>
    %226 = arith.mulf %225, %180 : vector<8x256xf32>
    %227 = arith.addf %223, %226 : vector<8x256xf32>
    %c11_32 = arith.constant 11 : index
    %228 = memref.load %arg6[%c11_32] : memref<32xf32, #tpu.memory_space<smem>>
    %229 = vector.broadcast %228 : f32 to vector<8x256xf32>
    %230 = arith.mulf %229, %181 : vector<8x256xf32>
    %231 = arith.addf %227, %230 : vector<8x256xf32>
    %c12_33 = arith.constant 12 : index
    %232 = memref.load %arg6[%c12_33] : memref<32xf32, #tpu.memory_space<smem>>
    %233 = vector.broadcast %232 : f32 to vector<8x256xf32>
    %234 = arith.mulf %233, %182 : vector<8x256xf32>
    %235 = arith.addf %231, %234 : vector<8x256xf32>
    %c13_34 = arith.constant 13 : index
    %236 = memref.load %arg6[%c13_34] : memref<32xf32, #tpu.memory_space<smem>>
    %237 = vector.broadcast %236 : f32 to vector<8x256xf32>
    %238 = arith.mulf %237, %183 : vector<8x256xf32>
    %239 = arith.addf %235, %238 : vector<8x256xf32>
    %c14_35 = arith.constant 14 : index
    %240 = memref.load %arg6[%c14_35] : memref<32xf32, #tpu.memory_space<smem>>
    %241 = vector.broadcast %240 : f32 to vector<8x256xf32>
    %242 = arith.mulf %241, %184 : vector<8x256xf32>
    %243 = arith.addf %239, %242 : vector<8x256xf32>
    %c15_36 = arith.constant 15 : index
    %244 = memref.load %arg6[%c15_36] : memref<32xf32, #tpu.memory_space<smem>>
    %245 = vector.broadcast %244 : f32 to vector<8x256xf32>
    %246 = arith.mulf %245, %185 : vector<8x256xf32>
    %247 = arith.addf %243, %246 : vector<8x256xf32>
    %c16_37 = arith.constant 16 : index
    %248 = memref.load %arg6[%c16_37] : memref<32xf32, #tpu.memory_space<smem>>
    %249 = vector.broadcast %248 : f32 to vector<8x256xf32>
    %250 = arith.mulf %249, %178 : vector<8x256xf32>
    %c17_38 = arith.constant 17 : index
    %251 = memref.load %arg6[%c17_38] : memref<32xf32, #tpu.memory_space<smem>>
    %252 = vector.broadcast %251 : f32 to vector<8x256xf32>
    %253 = arith.mulf %252, %179 : vector<8x256xf32>
    %254 = arith.addf %250, %253 : vector<8x256xf32>
    %c18_39 = arith.constant 18 : index
    %255 = memref.load %arg6[%c18_39] : memref<32xf32, #tpu.memory_space<smem>>
    %256 = vector.broadcast %255 : f32 to vector<8x256xf32>
    %257 = arith.mulf %256, %180 : vector<8x256xf32>
    %258 = arith.addf %254, %257 : vector<8x256xf32>
    %c19_40 = arith.constant 19 : index
    %259 = memref.load %arg6[%c19_40] : memref<32xf32, #tpu.memory_space<smem>>
    %260 = vector.broadcast %259 : f32 to vector<8x256xf32>
    %261 = arith.mulf %260, %181 : vector<8x256xf32>
    %262 = arith.addf %258, %261 : vector<8x256xf32>
    %c20_41 = arith.constant 20 : index
    %263 = memref.load %arg6[%c20_41] : memref<32xf32, #tpu.memory_space<smem>>
    %264 = vector.broadcast %263 : f32 to vector<8x256xf32>
    %265 = arith.mulf %264, %182 : vector<8x256xf32>
    %266 = arith.addf %262, %265 : vector<8x256xf32>
    %c21_42 = arith.constant 21 : index
    %267 = memref.load %arg6[%c21_42] : memref<32xf32, #tpu.memory_space<smem>>
    %268 = vector.broadcast %267 : f32 to vector<8x256xf32>
    %269 = arith.mulf %268, %183 : vector<8x256xf32>
    %270 = arith.addf %266, %269 : vector<8x256xf32>
    %c22_43 = arith.constant 22 : index
    %271 = memref.load %arg6[%c22_43] : memref<32xf32, #tpu.memory_space<smem>>
    %272 = vector.broadcast %271 : f32 to vector<8x256xf32>
    %273 = arith.mulf %272, %184 : vector<8x256xf32>
    %274 = arith.addf %270, %273 : vector<8x256xf32>
    %c23_44 = arith.constant 23 : index
    %275 = memref.load %arg6[%c23_44] : memref<32xf32, #tpu.memory_space<smem>>
    %276 = vector.broadcast %275 : f32 to vector<8x256xf32>
    %277 = arith.mulf %276, %185 : vector<8x256xf32>
    %278 = arith.addf %274, %277 : vector<8x256xf32>
    %c24_45 = arith.constant 24 : index
    %279 = memref.load %arg6[%c24_45] : memref<32xf32, #tpu.memory_space<smem>>
    %280 = vector.broadcast %279 : f32 to vector<8x256xf32>
    %281 = arith.mulf %280, %178 : vector<8x256xf32>
    %c25_46 = arith.constant 25 : index
    %282 = memref.load %arg6[%c25_46] : memref<32xf32, #tpu.memory_space<smem>>
    %283 = vector.broadcast %282 : f32 to vector<8x256xf32>
    %284 = arith.mulf %283, %179 : vector<8x256xf32>
    %285 = arith.addf %281, %284 : vector<8x256xf32>
    %c26_47 = arith.constant 26 : index
    %286 = memref.load %arg6[%c26_47] : memref<32xf32, #tpu.memory_space<smem>>
    %287 = vector.broadcast %286 : f32 to vector<8x256xf32>
    %288 = arith.mulf %287, %180 : vector<8x256xf32>
    %289 = arith.addf %285, %288 : vector<8x256xf32>
    %c27_48 = arith.constant 27 : index
    %290 = memref.load %arg6[%c27_48] : memref<32xf32, #tpu.memory_space<smem>>
    %291 = vector.broadcast %290 : f32 to vector<8x256xf32>
    %292 = arith.mulf %291, %181 : vector<8x256xf32>
    %293 = arith.addf %289, %292 : vector<8x256xf32>
    %c28_49 = arith.constant 28 : index
    %294 = memref.load %arg6[%c28_49] : memref<32xf32, #tpu.memory_space<smem>>
    %295 = vector.broadcast %294 : f32 to vector<8x256xf32>
    %296 = arith.mulf %295, %182 : vector<8x256xf32>
    %297 = arith.addf %293, %296 : vector<8x256xf32>
    %c29_50 = arith.constant 29 : index
    %298 = memref.load %arg6[%c29_50] : memref<32xf32, #tpu.memory_space<smem>>
    %299 = vector.broadcast %298 : f32 to vector<8x256xf32>
    %300 = arith.mulf %299, %183 : vector<8x256xf32>
    %301 = arith.addf %297, %300 : vector<8x256xf32>
    %c30_51 = arith.constant 30 : index
    %302 = memref.load %arg6[%c30_51] : memref<32xf32, #tpu.memory_space<smem>>
    %303 = vector.broadcast %302 : f32 to vector<8x256xf32>
    %304 = arith.mulf %303, %184 : vector<8x256xf32>
    %305 = arith.addf %301, %304 : vector<8x256xf32>
    %c31_52 = arith.constant 31 : index
    %306 = memref.load %arg6[%c31_52] : memref<32xf32, #tpu.memory_space<smem>>
    %307 = vector.broadcast %306 : f32 to vector<8x256xf32>
    %308 = arith.mulf %307, %185 : vector<8x256xf32>
    %309 = arith.addf %305, %308 : vector<8x256xf32>
    %310 = tpu.concatenate %216, %247, %278, %309 in 1 : vector<8x256xf32>, vector<8x256xf32>, vector<8x256xf32>, vector<8x256xf32> -> vector<8x1024xf32>
    %c0_53 = arith.constant 0 : index
    %c0_54 = arith.constant 0 : index
    %311 = vector.load %arg8[%c0_53, %c0_54] : memref<8x1024xf32, #tpu.memory_space<vmem>>, vector<8x1024xf32>
    tpu.vector_store %arg8[%c0_53, %c0_54], %310 {strides = array<i32>} : memref<8x1024xf32, #tpu.memory_space<vmem>>, vector<8x1024xf32>,
    return
  }
  func.func @transform_0(%arg0: i32) -> (i32, i32) {
    %c0_i32 = arith.constant 0 : i32
    %c0_i32_0 = arith.constant 0 : i32
    %c0_i32_1 = arith.constant 0 : i32
    return %c0_i32, %c0_i32_0 : i32, i32
  }
  func.func @transform_1(%arg0: i32) -> (i32, i32) {
    %c0_i32 = arith.constant 0 : i32
    %c0_i32_0 = arith.constant 0 : i32
    %c0_i32_1 = arith.constant 0 : i32
    return %c0_i32, %c0_i32_0 : i32, i32
  }
  func.func @transform_2(%arg0: i32) -> i32 {
    %c0_i32 = arith.constant 0 : i32
    %c0_i32_0 = arith.constant 0 : i32
    return %c0_i32 : i32
  }
  func.func @transform_3(%arg0: i32) -> (i32, i32) {
    %c0_i32 = arith.constant 0 : i32
    %c0_i32_0 = arith.constant 0 : i32
    %c0_i32_1 = arith.constant 0 : i32
    return %c0_i32, %c0_i32_0 : i32, i32
  }
  func.func @transform_4(%arg0: i32) -> (i32, i32) {
    %c0_i32 = arith.constant 0 : i32
    %c0_i32_0 = arith.constant 0 : i32
    %c0_i32_1 = arith.constant 0 : i32
    return %c0_i32, %c0_i32_0 : i32, i32
  }
  func.func @transform_5(%arg0: i32) -> i32 {
    %c0_i32 = arith.constant 0 : i32
    %c0_i32_0 = arith.constant 0 : i32
    return %c0_i32 : i32
  }
  func.func @transform_6(%arg0: i32) -> (i32, i32) {
    %c0_i32 = arith.constant 0 : i32
    %c0_i32_0 = arith.constant 0 : i32
    return %arg0, %c0_i32 : i32, i32
  }
  func.func @transform_7(%arg0: i32) -> (i32, i32) {
    %c0_i32 = arith.constant 0 : i32
    %c0_i32_0 = arith.constant 0 : i32
    return %arg0, %c0_i32 : i32, i32
  }
}

</mosaic_0001>

<bundles_post_ra>
// kernel: tpu_custom_call.1
= control target key start
LH: loop header
LB: loop body
LE: loop exit
PB: predicated region body
PF: predicated region fallthrough
CT: control target
= control target key end

     0   :  { %12 = vsyncpa [#allocation3], 0  ;;  %s2797_s0 = inlined_call_operand.hbm [shape: f32[1,1024], index: 0, kind: input, shape index: {}]   ;;  %s2798_s1 = inlined_call_operand.hbm [shape: f32[1,1024], index: 1, kind: input, shape index: {}]   ;;  %s2799_s2 = inlined_call_operand.vmem [shape: f32[32], index: 2, kind: input, shape index: {}]   ;;  %s2800_s3 = inlined_call_operand.hbm [shape: f32[1,2048], index: 3, kind: input, shape index: {}]   ;;  %s2801_s4 = inlined_call_operand.hbm [shape: f32[1,2048], index: 4, kind: input, shape index: {}]   ;;  %s2802_s5 = inlined_call_operand.vmem [shape: f32[32], index: 5, kind: input, shape index: {}]   ;;  %s2803_s6 = inlined_call_operand.hbm [shape: f32[8,1024], index: 6, kind: input, shape index: {}]   ;;  %s2804_s7 = inlined_call_operand.hbm [shape: f32[8,1024], index: 7, kind: output, shape index: {}]  }
   0x1   :  { %13 = vsyncpa [#allocation7], 0 }
   0x2   :  { %14 = vsyncpa [#allocation5], 0 }
   0x3   :  { %15 = vsyncpa [#allocation11], 0 }
   0x4   :  { %16 = vsyncpa [#allocation13], 0 }
   0x5   :  { %17 = vsyncpa [#allocation4], 0  ;;  %s1477_s24 = smov [#allocation6]   ;;  %s1478_s26 = smov [#allocation10]  }
   0x6   :  { %s34_s25 = sshll.u32 %s1477_s24, 4  ;;  %s64_s27 = sshll.u32 %s1478_s26, 4  ;;  %s35_s25 = int_to_ptr.vmem [resolvable:$true] %s34_s25  ;;  %s65_s27 = int_to_ptr.vmem [resolvable:$true] %s64_s27 }
   0x7   :  { %s1325_s28 = scalar_lea.vmem %s35_s25, 128  ;;  %p1330_p1 = scmp.lt.s32.totalorder %s35_s25, %s35_s25 }
   0x8   :  { %p1326_p0 = scmp.ne.s32.totalorder %s35_s25, %s1325_s28  ;;  %p1331_p2 = scmp.lt.s32.totalorder %s1325_s28, %s1325_s28 }
   0xa   :  { %p1332_p3 = por %p1331_p2, %p1330_p1 }
   0xc   :  { %p1333_p4 = pnand %p1332_p3, %p1326_p0 }
   0xe   :  { %1336 = shalt.err (!%p1333_p4)
}
   0xf   :  { %37 = dma.hbm_to_vmem [thread:$0]  %s2798_s1, 128, %s35_s25, [#allocation7]  }
  0x10   :  { %s1345_s8 = scalar_lea.vmem %s65_s27, 256  ;;  %p1350_p6 = scmp.lt.s32.totalorder %s65_s27, %s65_s27 }
  0x11   :  { %p1346_p5 = scmp.ne.s32.totalorder %s65_s27, %s1345_s8  ;;  %p1351_p7 = scmp.lt.s32.totalorder %s1345_s8, %s1345_s8 }
  0x13   :  { %p1352_p8 = por %p1351_p7, %p1350_p6 }
  0x15   :  { %p1353_p9 = pnand %p1352_p8, %p1346_p5 }
  0x17   :  { %1356 = shalt.err (!%p1353_p9)
}
  0x18   :  { %67 = dma.hbm_to_vmem [thread:$0]  %s2801_s4, 256, %s65_s27, [#allocation11]  }
  0x19   :  { %s44_s13 = sshll.u32 %s2799_s2, 4  ;;  %s1479_s14 = smov [#allocation2]   ;;  %s45_s13 = int_to_ptr.vmem [resolvable:$true] %s44_s13 }
  0x1a   :  { %s24_s15 = sshll.u32 %s1479_s14, 4  ;;  %s25_s15 = int_to_ptr.vmem [resolvable:$true] %s24_s15 }
  0x1b   :  { %s1365_s1 = scalar_lea.vmem %s25_s15, 128  ;;  %p1370_p11 = scmp.lt.s32.totalorder %s25_s15, %s25_s15 }
  0x1c   :  { %p1366_p10 = scmp.ne.s32.totalorder %s25_s15, %s1365_s1  ;;  %p1371_p12 = scmp.lt.s32.totalorder %s1365_s1, %s1365_s1 }
  0x1e   :  { %p1372_p13 = por %p1371_p12, %p1370_p11 }
  0x20   :  { %p1373_p0 = pnand %p1372_p13, %p1366_p10 }
  0x22   :  { %1376 = shalt.err (!%p1373_p0)
}
  0x23   :  { %27 = dma.hbm_to_vmem [thread:$0]  %s2797_s0, 128, %s25_s15, [#allocation3]  }
  0x24   :  { %s1377_s4 = scalar_lea.vmem %s45_s13, 16  ;;  %p1382_p2 = scmp.lt.s32.totalorder %s45_s13, %s45_s13 }
  0x25   :  { %p1378_p1 = scmp.ne.s32.totalorder %s45_s13, %s1377_s4  ;;  %p1383_p3 = scmp.lt.s32.totalorder %s1377_s4, %s1377_s4 }
  0x27   :  { %p1384_p4 = por %p1383_p3, %p1382_p2 }
  0x29   :  { %p1385_p5 = pnand %p1384_p4, %p1378_p1 }
  0x2b   :  { %1388 = shalt.err (!%p1385_p5)
}
  0x2c   :  { %s1480_s2 = smov [#allocation8]   ;;  %s74_s20 = sshll.u32 %s2802_s5, 4  ;;  %s75_s20 = int_to_ptr.vmem [resolvable:$true] %s74_s20 }
  0x2d   :  { %47 = dma.vmem_to_smem %s45_s13, 16, %s1480_s2, [#allocation5]  }
  0x2e   :  { %s1481_s21 = smov [#allocation9]  }
  0x2f   :  { %s54_s22 = sshll.u32 %s1481_s21, 4  ;;  %s55_s22 = int_to_ptr.vmem [resolvable:$true] %s54_s22 }
  0x30   :  { %s1397_s23 = scalar_lea.vmem %s55_s22, 256  ;;  %p1402_p7 = scmp.lt.s32.totalorder %s55_s22, %s55_s22 }
  0x31   :  { %p1398_p6 = scmp.ne.s32.totalorder %s55_s22, %s1397_s23  ;;  %p1403_p8 = scmp.lt.s32.totalorder %s1397_s23, %s1397_s23 }
  0x33   :  { %p1404_p9 = por %p1403_p8, %p1402_p7 }
  0x35   :  { %p1405_p10 = pnand %p1404_p9, %p1398_p6 }
  0x37   :  { %1408 = shalt.err (!%p1405_p10)
}
  0x38   :  { %57 = dma.hbm_to_vmem [thread:$0]  %s2800_s3, 256, %s55_s22, [#allocation7]  }
  0x39   :  { %s1409_s25 = scalar_lea.vmem %s75_s20, 16  ;;  %p1414_p12 = scmp.lt.s32.totalorder %s75_s20, %s75_s20 }
  0x3a   :  { %p1410_p11 = scmp.ne.s32.totalorder %s75_s20, %s1409_s25  ;;  %p1415_p13 = scmp.lt.s32.totalorder %s1409_s25, %s1409_s25 }
  0x3c   :  { %p1416_p0 = por %p1415_p13, %p1414_p12 }
  0x3e   :  { %p1417_p1 = pnand %p1416_p0, %p1410_p11 }
  0x40   :  { %1420 = shalt.err (!%p1417_p1)
}
  0x41   :  { %s1482_s5 = smov [#allocation12]   ;;  %s1483_s26 = smov [#allocation14]  }
  0x42   :  { %77 = dma.vmem_to_smem %s75_s20, 16, %s1482_s5, [#allocation13]  }
  0x43   :  { %s84_s27 = sshll.u32 %s1483_s26, 4  ;;  %s85_s27 = int_to_ptr.vmem [resolvable:$true] %s84_s27 }
  0x44   :  { %s1429_s28 = scalar_lea.vmem %s85_s27, 1024  ;;  %p1434_p3 = scmp.lt.s32.totalorder %s85_s27, %s85_s27 }
  0x45   :  { %p1430_p2 = scmp.ne.s32.totalorder %s85_s27, %s1429_s28  ;;  %p1435_p4 = scmp.lt.s32.totalorder %s1429_s28, %s1429_s28 }
  0x47   :  { %p1436_p5 = por %p1435_p4, %p1434_p3 }
  0x49   :  { %p1437_p6 = pnand %p1436_p5, %p1430_p2 }
  0x4b   :  { %1440 = shalt.err (!%p1437_p6)
}
  0x4c   :  { %87 = dma.hbm_to_vmem [thread:$0]  %s2803_s6, 1024, %s85_s27, [#allocation11]  }
  0x4d   :  { %1461 = dma.done.wait [#allocation3], 128  }
  0x4e   :  { %1462 = vsyncadd [#allocation3], 4294967168 }
  0x4f   :  { %1463 = dma.done.wait [#allocation7], 128  }
  0x50   :  { %1464 = vsyncadd [#allocation7], 4294967168 }
  0x51   :  { %1465 = dma.done.wait [#allocation5], 16  }
  0x52   :  { %1466 = vsyncadd [#allocation5], 4294967280 }
  0x53   :  { %1467 = dma.done.wait [#allocation7], 256  }
  0x54   :  { %1468 = vsyncadd [#allocation7], 4294967040 }
  0x55   :  { %1469 = dma.done.wait [#allocation11], 256  }
  0x56   :  { %1470 = vsyncadd [#allocation11], 4294967040 }
  0x57   :  { %1471 = dma.done.wait [#allocation13], 16  }
  0x58   :  { %1472 = vsyncadd [#allocation13], 4294967280 }
  0x59   :  { %1473 = dma.done.wait [#allocation11], 1024  }
  0x5a   :  { %1474 = vsyncadd [#allocation11], 4294966272 }
  0x5b   :  { %109 = sfence }
  0x5c   :  { %v110_v0 = vld [vmem:[#allocation14] sm:$0xff]  ;;  %v111_v1 = vld [vmem:[#allocation14 + $0x8] sm:$0xff]  ;;  %v112_v2 = vld [vmem:[#allocation14 + $0x10] sm:$0xff]  ;;  %s1578_s6 = sld [smem:[#allocation8]]  ;;  %v167_v43 = vlaneseq }
  0x5d   :  { %v118_v3 = vadd.f32 %v111_v1, %v110_v0  ;;  %v113_v4 = vld [vmem:[#allocation14 + $0x18] sm:$0xff]  ;;  %v114_v6 = vld [vmem:[#allocation14 + $0x20] sm:$0xff]  ;;  %v115_v8 = vld [vmem:[#allocation14 + $0x28] sm:$0xff]  ;;  %s1580_s30 = sld [smem:[#allocation8 + $0x1]] }
  0x5e   :  { %v116_v10 = vld [vmem:[#allocation14 + $0x30] sm:$0xff]  ;;  %v117_v12 = vld [vmem:[#allocation14 + $0x38] sm:$0xff]  ;;  %s1582_s8 = sld [smem:[#allocation8 + $0x2]]  ;;  %v168_v44 = vshrl.u32 %v167_v43, 7 }
  0x5f   :  { %v119_v5 = vadd.f32 %v118_v3, %v112_v2  ;;  %s1584_s9 = sld [smem:[#allocation8 + $0x3]]  ;;  %v1614_v48 = vld [vmem:[#allocation2] sm:$0xff]  ;;  %v1630_v54 = vld [vmem:[#allocation6] sm:$0xff] }
  0x60   :  { %s1586_s10 = sld [smem:[#allocation8 + $0x4]]  ;;  %v1606_v45 = vsub.s32 0, %v168_v44  ;;  %v1608_v46 = vsub.s32 1, %v168_v44  ;;  %v1610_v47 = vsub.s32 2, %v168_v44  ;;  %v1616_v49 = vsub.s32 3, %v168_v44 }
  0x61   :  { %v120_v7 = vadd.f32 %v119_v5, %v113_v4  ;;  %s1588_s11 = sld [smem:[#allocation8 + $0x5]]  ;;  %v1618_v50 = vsub.s32 4, %v168_v44  ;;  %v1620_v51 = vsub.s32 5, %v168_v44  ;;  %v1624_v52 = vsub.s32 6, %v168_v44 }
  0x62   :  { %s1590_s12 = sld [smem:[#allocation8 + $0x6]]  ;;  %v1626_v53 = vsub.s32 7, %v168_v44  ;;  %v170_v56 = vrot.slane %v1614_v48, %v1606_v45  ;;  %v174_v57 = vrot.slane %v1614_v48, %v1608_v46  ;;  %v178_v58 = vrot.slane %v1614_v48, %v1610_v47 }
  0x63   :  { %v121_v9 = vadd.f32 %v120_v7, %v114_v6  ;;  %s1592_s13 = sld [smem:[#allocation8 + $0x7]]  ;;  %v182_v59 = vrot.slane %v1614_v48, %v1616_v49  ;;  %v186_v60 = vrot.slane %v1614_v48, %v1618_v50  ;;  %v190_v61 = vrot.slane %v1614_v48, %v1620_v51 }
  0x64   :  { %s1594_s14 = sld [smem:[#allocation8 + $0x8]]  ;;  %2807 = vst [vmem:[#allocation24_spill] sm:$0xff] %v1626_v53  ;;  %v194_v62 = vrot.slane %v1614_v48, %v1624_v52  ;;  %v198_v63 = vrot.slane %v1614_v48, %v1626_v53  ;;  %v232_v5 = vrot.slane %v1630_v54, %v1616_v49 }
  0x65   :  { %v122_v11 = vadd.f32 %v121_v9, %v115_v8  ;;  %s1596_s15 = sld [smem:[#allocation8 + $0x9]]  ;;  %v240_v9 = vrot.slane %v1630_v54, %v1620_v51 }
  0x66   :  { %s1598_s1 = sld [smem:[#allocation8 + $0xa]] }
  0x67   :  { %v123_v13 = vadd.f32 %v122_v11, %v116_v10  ;;  %s1600_s16 = sld [smem:[#allocation8 + $0xb]]  ;;  %v248_v11 = vrot.slane %v1630_v54, %v1626_v53 }
  0x68   :  { %s1602_s17 = sld [smem:[#allocation8 + $0xc]] }
  0x69   :  { %v124_v14 = vadd.f32 %v123_v13, %v117_v12  ;;  %s1604_s4 = sld [smem:[#allocation8 + $0xd]]  ;;  %v270_v13 = vstv %s1580_s30 }
  0x6a   :  { %s1612_s2 = sld [smem:[#allocation8 + $0xe]] }
  0x6b   :  { %125 = vadd.xlane.f32.xlu0 %v124_v14  ;;  %s1622_s18 = sld [smem:[#allocation8 + $0xf]]  ;;  %v276_v14 = vstv %s1582_s8 }
  0x6c   :  { %s1628_s19 = sld [smem:[#allocation8 + $0x10]] }
  0x6d   :  { %s1632_s20 = sld [smem:[#allocation8 + $0x11]] }
  0x6e   :  { %s1640_s21 = sld [smem:[#allocation8 + $0x12]] }
  0x6f   :  { %s1650_s22 = sld [smem:[#allocation8 + $0x13]] }
  0x70   :  { %s1660_s23 = sld [smem:[#allocation8 + $0x14]] }
  0x71   :  { %s1670_s0 = sld [smem:[#allocation8 + $0x15]] }
  0x72   :  { %s1680_s24 = sld [smem:[#allocation8 + $0x16]] }
  0x73   :  { %s1688_s25 = sld [smem:[#allocation8 + $0x17]] }
  0x74   :  { %s1694_s5 = sld [smem:[#allocation8 + $0x18]] }
  0x75   :  { %s1698_s26 = sld [smem:[#allocation8 + $0x19]] }
  0x76   :  { %s1702_s27 = sld [smem:[#allocation8 + $0x1a]] }
  0x77   :  { %s1711_s28 = sld [smem:[#allocation8 + $0x1b]] }
  0x78   :  { %s1717_s3 = sld [smem:[#allocation8 + $0x1c]] }
  0x79   :  { %s1725_s29 = sld [smem:[#allocation8 + $0x1d]] }
  0x7a   :  { %s1737_s30 = sld [smem:[#allocation8 + $0x1f]] }
  0x7b   :  { %s2310_s8 = sld [smem:[#allocation12]] }
  0xf4   :  { %v126_v15 = vpop.xlane.xlu0 %125 }
  0xf5   :  { %v128_v16 = vmul.f32 0.0009765625, %v126_v15  ;;  %v282_v15 = vstv %s1584_s9  ;;  %s2312_s9 = sld [smem:[#allocation12 + $0x1]] }
  0xf7   :  { %v1546_v17 = vsub.f32 %v110_v0, %v128_v16  ;;  %v1548_v18 = vsub.f32 %v111_v1, %v128_v16  ;;  %v1550_v19 = vsub.f32 %v112_v2, %v128_v16  ;;  %v1552_v20 = vsub.f32 %v113_v4, %v128_v16 }
  0xf8   :  { %v1558_v23 = vsub.f32 %v114_v6, %v128_v16  ;;  %v1562_v26 = vsub.f32 %v115_v8, %v128_v16  ;;  %v1566_v29 = vsub.f32 %v116_v10, %v128_v16  ;;  %v1570_v32 = vsub.f32 %v117_v12, %v128_v16 }
  0xf9   :  { %v137_v21 = vmul.f32 %v1546_v17, %v1546_v17  ;;  %v138_v22 = vmul.f32 %v1548_v18, %v1548_v18  ;;  %v139_v24 = vmul.f32 %v1550_v19, %v1550_v19  ;;  %v140_v27 = vmul.f32 %v1552_v20, %v1552_v20 }
  0xfa   :  { %v141_v30 = vmul.f32 %v1558_v23, %v1558_v23  ;;  %v142_v33 = vmul.f32 %v1562_v26, %v1562_v26  ;;  %v143_v35 = vmul.f32 %v1566_v29, %v1566_v29  ;;  %v144_v37 = vmul.f32 %v1570_v32, %v1570_v32 }
  0xfb   :  { %v145_v25 = vadd.f32 %v138_v22, %v137_v21  ;;  %v220_v0 = vrot.slane %v1630_v54, %v1606_v45  ;;  %v224_v1 = vrot.slane %v1630_v54, %v1608_v46  ;;  %v228_v4 = vrot.slane %v1630_v54, %v1610_v47 }
  0xfc   :  { %v236_v8 = vrot.slane %v1630_v54, %v1618_v50  ;;  %v244_v10 = vrot.slane %v1630_v54, %v1624_v52  ;;  %v266_v12 = vstv %s1578_s6  ;;  %v288_v16 = vstv %s1586_s10  ;;  %s1733_s6 = sld [smem:[#allocation8 + $0x1e]] }
  0xfd   :  { %v146_v28 = vadd.f32 %v145_v25, %v139_v24  ;;  %v304_v21 = vstv %s1592_s13  ;;  %v310_v25 = vstv %s1594_s14  ;;  %s2314_s10 = sld [smem:[#allocation12 + $0x2]] }
  0xfe   :  { %s2320_s13 = sld [smem:[#allocation12 + $0x5]] }
  0xff   :  { %v147_v31 = vadd.f32 %v146_v28, %v140_v27  ;;  %v314_v27 = vstv %s1596_s15  ;;  %s2322_s14 = sld [smem:[#allocation12 + $0x6]] }
 0x100   :  { %s2324_s15 = sld [smem:[#allocation12 + $0x7]] }
 0x101   :  { %v148_v34 = vadd.f32 %v147_v31, %v141_v30 }
 0x103   :  { %v149_v36 = vadd.f32 %v148_v34, %v142_v33  ;;  %v320_v33 = vstv %s1598_s1  ;;  %v326_v34 = vstv %s1600_s16  ;;  %s2326_s1 = sld [smem:[#allocation12 + $0x8]] }
 0x104   :  { %s2328_s16 = sld [smem:[#allocation12 + $0x9]] }
 0x105   :  { %v150_v38 = vadd.f32 %v149_v36, %v143_v35  ;;  %v332_v35 = vstv %s1602_s17  ;;  %v336_v36 = vstv %s1604_s4  ;;  %s2330_s17 = sld [smem:[#allocation12 + $0xa]] }
 0x106   :  { %s2332_s4 = sld [smem:[#allocation12 + $0xb]] }
 0x107   :  { %v151_v39 = vadd.f32 %v150_v38, %v144_v37  ;;  %v342_v37 = vstv %s1612_s2  ;;  %s2334_s2 = sld [smem:[#allocation12 + $0xc]] }
 0x109   :  { %152 = vadd.xlane.f32.xlu0 %v151_v39 }
 0x192   :  { %v153_v40 = vpop.xlane.xlu0 %152 }
 0x193   :  { %v154_v41 = vmul.f32 0.0009765625, %v153_v40 }
 0x195   :  { %v155_v42 = vadd.f32 1e-05, %v154_v41  ;;  %v358_v41 = vstv %s1632_s20  ;;  %s2342_s20 = sld [smem:[#allocation12 + $0xf]] }
 0x197   :  { %1249 = vrsqrt.f32 %v155_v42  ;;  %v364_v42 = vstv %s1640_s21  ;;  %s2344_s21 = sld [smem:[#allocation12 + $0x10]] }
 0x1a4   :  { %v1634_v55 = vpop.eup %1249 }
 0x1a5   :  { %v157_v2 = vmul.f32 %v1634_v55, %v1546_v17  ;;  %v159_v3 = vmul.f32 %v1634_v55, %v1550_v19  ;;  %v158_v6 = vmul.f32 %v1634_v55, %v1548_v18  ;;  %v160_v7 = vmul.f32 %v1634_v55, %v1552_v20 }
 0x1a6   :  { %v292_v17 = vstv %s1588_s11  ;;  %v298_v20 = vstv %s1590_s12  ;;  %v161_v28 = vmul.f32 %v1634_v55, %v1558_v23  ;;  %v162_v30 = vmul.f32 %v1634_v55, %v1562_v26  ;;  %s2316_s11 = sld [smem:[#allocation12 + $0x3]] }
 0x1a7   :  { %v207_v18 = vmul.f32 %v170_v56, %v157_v2  ;;  %v209_v19 = vmul.f32 %v178_v58, %v159_v3  ;;  %v208_v22 = vmul.f32 %v174_v57, %v158_v6  ;;  %v210_v24 = vmul.f32 %v182_v59, %v160_v7  ;;  %s2318_s12 = sld [smem:[#allocation12 + $0x4]] }
 0x1a8   :  { %v163_v31 = vmul.f32 %v1634_v55, %v1566_v29  ;;  %v348_v26 = vstv %s1622_s18  ;;  %v354_v29 = vstv %s1628_s19  ;;  %v164_v43 = vmul.f32 %v1634_v55, %v1570_v32  ;;  %s2336_s18 = sld [smem:[#allocation12 + $0xd]] }
 0x1a9   :  { %v1719_v38 = vadd.f32 %v220_v0, %v207_v18  ;;  %v1721_v23 = vadd.f32 %v228_v4, %v209_v19  ;;  %v1727_v39 = vadd.f32 %v224_v1, %v208_v22  ;;  %v1729_v40 = vadd.f32 %v232_v5, %v210_v24  ;;  %s2338_s19 = sld [smem:[#allocation12 + $0xe]] }
 0x1aa   :  { %v211_v44 = vmul.f32 %v186_v60, %v161_v28  ;;  %v212_v56 = vmul.f32 %v190_v61, %v162_v30  ;;  %v213_v57 = vmul.f32 %v194_v62, %v163_v31  ;;  %v370_v58 = vstv %s1650_s22  ;;  %s2348_s22 = sld [smem:[#allocation12 + $0x11]] }
 0x1ab   :  { %v376_v59 = vstv %s1660_s23  ;;  %v380_v0 = vstv %s1670_s0  ;;  %v386_v1 = vstv %s1680_s24  ;;  %v267_v2 = vmul.f32 %v266_v12, %v1719_v38  ;;  %s2354_s23 = sld [smem:[#allocation12 + $0x12]] }
 0x1ac   :  { %v271_v3 = vmul.f32 %v270_v13, %v1721_v23  ;;  %v392_v4 = vstv %s1688_s25  ;;  %v398_v5 = vstv %s1694_s5  ;;  %v268_v32 = vmul.f32 %v266_v12, %v1727_v39  ;;  %s2364_s0 = sld [smem:[#allocation12 + $0x13]] }
 0x1ad   :  { %v272_v55 = vmul.f32 %v270_v13, %v1729_v40  ;;  %v402_v60 = vstv %s1698_s26  ;;  %v408_v61 = vstv %s1702_s27  ;;  %v214_v62 = vmul.f32 %v198_v63, %v164_v43  ;;  %s2374_s24 = sld [smem:[#allocation12 + $0x14]] }
 0x1ae   :  { %v1754_v6 = vadd.f32 %v236_v8, %v211_v44  ;;  %v1756_v7 = vadd.f32 %v240_v9, %v212_v56  ;;  %v1758_v18 = vadd.f32 %v244_v10, %v213_v57  ;;  %v289_v12 = vmul.f32 %v288_v16, %v1719_v38  ;;  %s2386_s25 = sld [smem:[#allocation12 + $0x15]] }
 0x1af   :  { %v290_v13 = vmul.f32 %v288_v16, %v1727_v39  ;;  %v293_v19 = vmul.f32 %v292_v17, %v1721_v23  ;;  %v294_v48 = vmul.f32 %v292_v17, %v1729_v40  ;;  %v273_v63 = vadd.f32 %v271_v3, %v267_v2  ;;  %s2396_s5 = sld [smem:[#allocation12 + $0x16]] }
 0x1b0   :  { %v414_v8 = vstv %s1711_s28  ;;  %v420_v22 = vstv %s1717_s3  ;;  %v424_v9 = vstv %s1725_s29  ;;  %v274_v10 = vadd.f32 %v272_v55, %v268_v32  ;;  %s2406_s26 = sld [smem:[#allocation12 + $0x17]] }
 0x1b1   :  { %v311_v24 = vmul.f32 %v310_v25, %v1719_v38  ;;  %v315_v28 = vmul.f32 %v314_v27, %v1721_v23  ;;  %v430_v16 = vstv %s1733_s6  ;;  %v1777_v17 = vadd.f32 %v248_v11, %v214_v62  ;;  %s2416_s27 = sld [smem:[#allocation12 + $0x18]] }
 0x1b2   :  { %v277_v30 = vmul.f32 %v276_v14, %v1754_v6  ;;  %v278_v31 = vmul.f32 %v276_v14, %v1756_v7  ;;  %v436_v43 = vstv %s1737_s30  ;;  %v283_v44 = vmul.f32 %v282_v15, %v1758_v18  ;;  %s2426_s28 = sld [smem:[#allocation12 + $0x19]] }
 0x1b3   :  { %v295_v56 = vadd.f32 %v293_v19, %v289_v12  ;;  %v296_v57 = vadd.f32 %v294_v48, %v290_v13  ;;  %v299_v54 = vmul.f32 %v298_v20, %v1754_v6  ;;  %v300_v2 = vmul.f32 %v298_v20, %v1756_v7  ;;  %s2435_s3 = sld [smem:[#allocation12 + $0x1a]] }
 0x1b4   :  { %v279_v11 = vadd.f32 %v277_v30, %v273_v63  ;;  %v312_v14 = vmul.f32 %v310_v25, %v1727_v39  ;;  %v316_v3 = vmul.f32 %v314_v27, %v1729_v40  ;;  %v280_v32 = vadd.f32 %v278_v31, %v274_v10  ;;  %s2685_s29 = sld [smem:[#allocation12 + $0x1b]] }
 0x1b5   :  { %v317_v55 = vadd.f32 %v315_v28, %v311_v24  ;;  %v333_v62 = vmul.f32 %v332_v35, %v1719_v38  ;;  %v337_v12 = vmul.f32 %v336_v36, %v1721_v23  ;;  %v284_v20 = vmul.f32 %v282_v15, %v1777_v17  ;;  %s2693_s6 = sld [smem:[#allocation12 + $0x1c]] }
 0x1b6   :  { %v305_v25 = vmul.f32 %v304_v21, %v1758_v18  ;;  %v334_v27 = vmul.f32 %v332_v35, %v1727_v39  ;;  %v338_v13 = vmul.f32 %v336_v36, %v1729_v40  ;;  %v301_v19 = vadd.f32 %v299_v54, %v295_v56  ;;  %s2739_s30 = sld [smem:[#allocation12 + $0x1d]] }
 0x1b7   :  { %v302_v48 = vadd.f32 %v300_v2, %v296_v57  ;;  %v306_v63 = vmul.f32 %v304_v21, %v1777_v17  ;;  %v321_v15 = vmul.f32 %v320_v33, %v1754_v6  ;;  %v1825_v10 = vadd.f32 %v283_v44, %v279_v11 }
 0x1b8   :  { %v318_v24 = vadd.f32 %v316_v3, %v312_v14  ;;  %v355_v35 = vmul.f32 %v354_v29, %v1719_v38  ;;  %v359_v36 = vmul.f32 %v358_v41, %v1721_v23  ;;  %v1833_v28 = vadd.f32 %v284_v20, %v280_v32 }
 0x1b9   :  { %v322_v21 = vmul.f32 %v320_v33, %v1756_v7  ;;  %v323_v30 = vadd.f32 %v321_v15, %v317_v55  ;;  %v339_v31 = vadd.f32 %v337_v12, %v333_v62  ;;  %v327_v44 = vmul.f32 %v326_v34, %v1758_v18 }
 0x1ba   :  { %v340_v56 = vadd.f32 %v338_v13, %v334_v27  ;;  %v356_v57 = vmul.f32 %v354_v29, %v1727_v39  ;;  %v360_v54 = vmul.f32 %v358_v41, %v1729_v40  ;;  %v1847_v11 = vadd.f32 %v305_v25, %v301_v19 }
 0x1bb   :  { %v1849_v2 = vadd.f32 %v306_v63, %v302_v48  ;;  %v328_v33 = vmul.f32 %v326_v34, %v1777_v17  ;;  %v343_v14 = vmul.f32 %v342_v37, %v1754_v6  ;;  %v324_v3 = vadd.f32 %v322_v21, %v318_v24 }
 0x1bc   :  { %v344_v29 = vmul.f32 %v342_v37, %v1756_v7  ;;  %v349_v41 = vmul.f32 %v348_v26, %v1758_v18  ;;  %v361_v32 = vadd.f32 %v359_v36, %v355_v35  ;;  %v1863_v55 = vadd.f32 %v327_v44, %v323_v30 }
 0x1bd   :  { %v345_v62 = vadd.f32 %v343_v14, %v339_v31  ;;  %v350_v34 = vmul.f32 %v348_v26, %v1777_v17  ;;  %v457_v12 = vand.u32 2147483647, %v1825_v10  ;;  %v362_v25 = vadd.f32 %v360_v54, %v356_v57 }
 0x1be   :  { %v346_v20 = vadd.f32 %v344_v29, %v340_v56  ;;  %v365_v37 = vmul.f32 %v364_v42, %v1754_v6  ;;  %v458_v27 = vand.u32 2147483647, %v1833_v28  ;;  %v377_v13 = vmul.f32 %v376_v59, %v1719_v38 }
 0x1bf   :  { %v378_v19 = vmul.f32 %v376_v59, %v1727_v39  ;;  %v381_v26 = vmul.f32 %v380_v0, %v1721_v23  ;;  %v382_v48 = vmul.f32 %v380_v0, %v1729_v40  ;;  %v1885_v63 = vadd.f32 %v328_v33, %v324_v3 }
 0x1c0   :  { %v366_v15 = vmul.f32 %v364_v42, %v1756_v7  ;;  %v367_v24 = vadd.f32 %v365_v37, %v361_v32  ;;  %v459_v35 = vand.u32 2147483647, %v1847_v11  ;;  %v1891_v36 = vadd.f32 %v349_v41, %v345_v62 }
 0x1c1   :  { %v371_v59 = vmul.f32 %v370_v58, %v1758_v18  ;;  %v372_v0 = vmul.f32 %v370_v58, %v1777_v17  ;;  %v473_v21 = vsub.f32 0.0, %v457_v12  ;;  %v1899_v30 = vadd.f32 %v350_v34, %v346_v20 }
 0x1c2   :  { %v368_v31 = vadd.f32 %v366_v15, %v362_v25  ;;  %v387_v42 = vmul.f32 %v386_v1, %v1754_v6  ;;  %v474_v44 = vsub.f32 0.0, %v458_v27  ;;  %v383_v56 = vadd.f32 %v381_v26, %v377_v13 }
 0x1c3   :  { %v384_v57 = vadd.f32 %v382_v48, %v378_v19  ;;  %v388_v54 = vmul.f32 %v386_v1, %v1756_v7  ;;  %v460_v33 = vand.u32 2147483647, %v1849_v2  ;;  %v1908_v14 = vadd.f32 %v371_v59, %v367_v24 }
 0x1c4   :  { %v393_v58 = vmul.f32 %v392_v4, %v1758_v18  ;;  %v394_v3 = vmul.f32 %v392_v4, %v1777_v17  ;;  %v475_v29 = vsub.f32 0.0, %v459_v35  ;;  %v399_v41 = vmul.f32 %v398_v5, %v1719_v38 }
 0x1c5   :  { %v403_v1 = vmul.f32 %v402_v60, %v1721_v23  ;;  %v461_v32 = vand.u32 2147483647, %v1863_v55  ;;  %v489_v62 = vmul.f32 1.442695, %v473_v21  ;;  %v1923_v34 = vadd.f32 %v372_v0, %v368_v31 }
 0x1c6   :  { %v400_v12 = vmul.f32 %v398_v5, %v1727_v39  ;;  %v404_v4 = vmul.f32 %v402_v60, %v1729_v40  ;;  %v491_v20 = vmul.f32 1.442695, %v474_v44  ;;  %v389_v25 = vadd.f32 %v387_v42, %v383_v56 }
 0x1c7   :  { %v390_v37 = vadd.f32 %v388_v54, %v384_v57  ;;  %v462_v27 = vand.u32 2147483647, %v1885_v63  ;;  %v476_v13 = vsub.f32 0.0, %v460_v33  ;;  %v409_v19 = vmul.f32 %v408_v61, %v1754_v6 }
 0x1c8   :  { %v421_v26 = vmul.f32 %v420_v22, %v1719_v38  ;;  %v425_v5 = vmul.f32 %v424_v9, %v1721_v23  ;;  %v493_v48 = vmul.f32 1.442695, %v475_v29  ;;  %v405_v60 = vadd.f32 %v403_v1, %v399_v41 }
 0x1c9   :  { %v463_v15 = vand.u32 2147483647, %v1891_v36  ;;  %v477_v24 = vsub.f32 0.0, %v461_v32  ;;  %1251 = vpow2.f32 %v489_v62  ;;  %v406_v35 = vadd.f32 %v404_v4, %v400_v12 }
 0x1ca   :  { %v422_v59 = vmul.f32 %v420_v22, %v1727_v39  ;;  %v426_v0 = vmul.f32 %v424_v9, %v1729_v40  ;;  %1253 = vpow2.f32 %v491_v20  ;;  %v410_v38 = vmul.f32 %v408_v61, %v1756_v7 }
 0x1cb   :  { %v464_v23 = vand.u32 2147483647, %v1899_v30  ;;  %v478_v21 = vsub.f32 0.0, %v462_v27  ;;  %v495_v31 = vmul.f32 1.442695, %v476_v13  ;;  %v1952_v42 = vadd.f32 %v393_v58, %v389_v25 }
 0x1cc   :  { %v415_v44 = vmul.f32 %v414_v8, %v1758_v18  ;;  %v427_v39 = vadd.f32 %v425_v5, %v421_v26  ;;  %1255 = vpow2.f32 %v493_v48  ;;  %v411_v22 = vadd.f32 %v409_v19, %v405_v60 }
 0x1cd   :  { %v465_v40 = vand.u32 2147483647, %v1908_v14  ;;  %v479_v9 = vsub.f32 0.0, %v463_v15  ;;  %v497_v56 = vmul.f32 1.442695, %v477_v24  ;;  %v1958_v57 = vadd.f32 %v394_v3, %v390_v37 }
 0x1ce   :  { %v412_v61 = vadd.f32 %v410_v38, %v406_v35  ;;  %v428_v54 = vadd.f32 %v426_v0, %v422_v59  ;;  %v431_v33 = vmul.f32 %v430_v16, %v1754_v6  ;;  %v466_v58 = vand.u32 2147483647, %v1923_v34 }
 0x1cf   :  { %v480_v29 = vsub.f32 0.0, %v464_v23  ;;  %1257 = vpow2.f32 %v495_v31  ;;  %v499_v41 = vmul.f32 1.442695, %v478_v21  ;;  %v416_v1 = vmul.f32 %v414_v8, %v1777_v17 }
 0x1d0   :  { %v432_v32 = vmul.f32 %v430_v16, %v1756_v7  ;;  %v433_v3 = vadd.f32 %v431_v33, %v427_v39  ;;  %v467_v62 = vand.u32 2147483647, %v1952_v42  ;;  %v1971_v12 = vadd.f32 %v415_v44, %v411_v22 }
 0x1d1   :  { %v481_v4 = vsub.f32 0.0, %v465_v40  ;;  %1259 = vpow2.f32 %v497_v56  ;;  %v501_v6 = vmul.f32 1.442695, %v479_v9  ;;  %v1973_v20 = vadd.f32 %v416_v1, %v412_v61 }
 0x1d2   :  { %v434_v25 = vadd.f32 %v432_v32, %v428_v54  ;;  %v437_v37 = vmul.f32 %v436_v43, %v1758_v18  ;;  %v468_v27 = vand.u32 2147483647, %v1958_v57  ;;  %v482_v8 = vsub.f32 0.0, %v466_v58 }
 0x1d3   :  { %1261 = vpow2.f32 %v499_v41  ;;  %v503_v13 = vmul.f32 1.442695, %v480_v29  ;;  %v438_v7 = vmul.f32 %v436_v43, %v1777_v17  ;;  %v483_v19 = vsub.f32 0.0, %v467_v62 }
 0x1d4   :  { %v1982_v16 = vadd.f32 %v437_v37, %v433_v3  ;;  %v469_v26 = vand.u32 2147483647, %v1971_v12  ;;  %1263 = vpow2.f32 %v501_v6  ;;  %v505_v5 = vmul.f32 1.442695, %v481_v4 }
 0x1d5   :  { %v1987_v60 = vadd.f32 %v438_v7, %v434_v25  ;;  %v470_v18 = vand.u32 2147483647, %v1973_v20  ;;  %v484_v24 = vsub.f32 0.0, %v468_v27  ;;  %1265 = vpow2.f32 %v503_v13 }
 0x1d6   :  { %v1985_v48 = vpop.eup %1251  ;;  %v507_v35 = vmul.f32 1.442695, %v482_v8  ;;  %v471_v17 = vand.u32 2147483647, %v1982_v16  ;;  %v509_v43 = vmul.f32 1.442695, %v483_v19  ;;  %1267 = vpow2.f32 %v505_v5 }
 0x1d7   :  { %v1990_v15 = vpop.eup %1253  ;;  %v485_v0 = vsub.f32 0.0, %v469_v26  ;;  %v521_v38 = vadd.f32 1.0, %v1985_v48  ;;  %v472_v23 = vand.u32 2147483647, %v1987_v60  ;;  %v486_v21 = vsub.f32 0.0, %v470_v18 }
 0x1d8   :  { %v530_v31 = vadd.f32 1.0, %v1990_v15  ;;  %1269 = vpow2.f32 %v507_v35  ;;  %v511_v44 = vmul.f32 1.442695, %v484_v24  ;;  %v487_v22 = vsub.f32 0.0, %v471_v17 }
 0x1d9   :  { %v1993_v59 = vpop.eup %1255  ;;  %1271 = vpow2.f32 %v509_v43  ;;  %v513_v9 = vmul.f32 1.442695, %v485_v0  ;;  %v488_v61 = vsub.f32 0.0, %v472_v23  ;;  %v515_v54 = vmul.f32 1.442695, %v486_v21 }
 0x1da   :  { %v539_v40 = vadd.f32 1.0, %v1993_v59  ;;  %1273 = vlog2.f32 %v521_v38  ;;  %v441_v29 = vmax.f32 %v1825_v10, 0.0  ;;  %v517_v41 = vmul.f32 1.442695, %v487_v22 }
 0x1db   :  { %1275 = vlog2.f32 %v530_v31  ;;  %v519_v25 = vmul.f32 1.442695, %v488_v61  ;;  %v524_v27 = vmul.f32 -0.5, %v1985_v48  ;;  %v533_v26 = vmul.f32 -0.5, %v1990_v15 }
 0x1dc   :  { %v1998_v39 = vpop.eup %1257  ;;  %1277 = vpow2.f32 %v511_v44  ;;  %v527_v18 = vand.u32 2147483647, %v1985_v48  ;;  %v536_v43 = vand.u32 2147483647, %v1990_v15  ;;  %v542_v0 = vmul.f32 -0.5, %v1993_v59 }
 0x1dd   :  { %v548_v33 = vadd.f32 1.0, %v1998_v39  ;;  %1279 = vlog2.f32 %v539_v40  ;;  %v525_v38 = vadd.f32 1.0, %v524_v27  ;;  %v551_v23 = vmul.f32 -0.5, %v1998_v39 }
 0x1de   :  { %v2001_v56 = vpop.eup %1259  ;;  %1281 = vpow2.f32 %v513_v9  ;;  %v534_v40 = vadd.f32 1.0, %v533_v26  ;;  %vm2039_vm0 = vcmp.lt.f32.partialorder %v527_v18, 0.0004427343  ;;  %vm2046_vm1 = vcmp.lt.f32.partialorder %v536_v43, 0.0004427343 }
 0x1df   :  { %v557_v3 = vadd.f32 1.0, %v2001_v56  ;;  %1283 = vpow2.f32 %v515_v54  ;;  %v560_v9 = vmul.f32 -0.5, %v2001_v56  ;;  %v554_v26 = vand.u32 2147483647, %v1998_v39 }
 0x1e0   :  { %v2004_v58 = vpop.eup %1261  ;;  %1285 = vlog2.f32 %v548_v33  ;;  %v545_v33 = vand.u32 2147483647, %v1993_v59  ;;  %v526_v18 = vmul.f32 %v1985_v48, %v525_v38  ;;  %v552_v44 = vadd.f32 1.0, %v551_v23 }
 0x1e1   :  { %v2010_v62 = vpop.eup %1263  ;;  %v566_v8 = vadd.f32 1.0, %v2004_v58  ;;  %1287 = vpow2.f32 %v517_v41  ;;  %v535_v5 = vmul.f32 %v1990_v15, %v534_v40  ;;  %v561_v19 = vadd.f32 1.0, %v560_v9 }
 0x1e2   :  { %v2017_v13 = vpop.eup %1265  ;;  %1289 = vlog2.f32 %v557_v3  ;;  %v575_v24 = vadd.f32 1.0, %v2010_v62  ;;  %v563_v43 = vand.u32 2147483647, %v2001_v56  ;;  %vm2058_vm2 = vcmp.lt.f32.partialorder %v545_v33, 0.0004427343 }
 0x1e3   :  { %v2025_v35 = vpop.eup %1267  ;;  %1291 = vpow2.f32 %v519_v25  ;;  %v584_v21 = vadd.f32 1.0, %v2017_v13  ;;  %v569_v25 = vmul.f32 -0.5, %v2004_v58  ;;  %vm2066_vm3 = vcmp.lt.f32.partialorder %v554_v26, 0.0004427343 }
 0x1e4   :  { %1293 = vlog2.f32 %v566_v8  ;;  %v593_v41 = vadd.f32 1.0, %v2025_v35  ;;  %v543_v8 = vadd.f32 1.0, %v542_v0  ;;  %v578_v40 = vmul.f32 -0.5, %v2010_v62 }
 0x1e5   :  { %v2032_v31 = vpop.eup %1269  ;;  %1295 = vlog2.f32 %v575_v24  ;;  %v553_v33 = vmul.f32 %v1998_v39, %v552_v44  ;;  %vm2077_vm4 = vcmp.lt.f32.partialorder %v563_v43, 0.0004427343  ;;  %v581_v39 = vand.u32 2147483647, %v2010_v62 }
 0x1e6   :  { %v2037_v61 = vpop.eup %1271  ;;  %1297 = vlog2.f32 %v584_v21  ;;  %v602_v17 = vadd.f32 1.0, %v2032_v31  ;;  %v544_v21 = vmul.f32 %v1993_v59, %v543_v8  ;;  %v570_v8 = vadd.f32 1.0, %v569_v25 }
 0x1e7   :  { %v1274_v3 = vpop.eup %1273  ;;  %1299 = vlog2.f32 %v593_v41  ;;  %v611_v48 = vadd.f32 1.0, %v2037_v61  ;;  %v590_v43 = vand.u32 2147483647, %v2017_v13  ;;  %vm2112_vm6 = vcmp.lt.f32.partialorder %v581_v39, 0.0004427343 }
 0x1e8   :  { %v1276_v22 = vpop.eup %1275  ;;  %v523_v0 = vmul.f32 0.6931472, %v1274_v3  ;;  %v572_v3 = vand.u32 2147483647, %v2004_v58  ;;  %1301 = vlog2.f32 %v602_v17  ;;  %v2825_v39 = vmax.f32 %v1847_v11, 0.0 }
 0x1e9   :  { %v2053_v24 = vpop.eup %1277  ;;  %v532_v23 = vmul.f32 0.6931472, %v1276_v22  ;;  %v562_v22 = vmul.f32 %v2001_v56, %v561_v19  ;;  %1303 = vlog2.f32 %v611_v48  ;;  %v579_v56 = vadd.f32 1.0, %v578_v40 }
 0x1ea   :  { %v1280_v7 = vpop.eup %1279  ;;  %v620_v41 = vadd.f32 1.0, %v2053_v24  ;;  %v529_v32 = vsel %vm2039_vm0, %v526_v18, %v523_v0  ;;  %v587_v19 = vmul.f32 -0.5, %v2017_v13  ;;  %vm2093_vm5 = vcmp.lt.f32.partialorder %v572_v3, 0.0004427343 }
 0x1eb   :  { %v2063_v38 = vpop.eup %1281  ;;  %v541_v4 = vmul.f32 0.6931472, %v1280_v7  ;;  %v538_v7 = vsel %vm2046_vm1, %v535_v5, %v532_v23  ;;  %v571_v5 = vmul.f32 %v2004_v58, %v570_v8  ;;  %v596_v48 = vmul.f32 -0.5, %v2025_v35 }
 0x1ec   :  { %v2071_v9 = vpop.eup %1283  ;;  %v629_v17 = vadd.f32 1.0, %v2063_v38  ;;  %1305 = vlog2.f32 %v620_v41  ;;  %v2104_v23 = vadd.f32 %v529_v32, %v441_v29  ;;  %v2820_v3 = vmax.f32 %v1833_v28, 0.0 }
 0x1ed   :  { %v1286_v6 = vpop.eup %1285  ;;  %v638_v18 = vadd.f32 1.0, %v2071_v9  ;;  %v547_v27 = vsel %vm2058_vm2, %v544_v21, %v541_v4  ;;  %v580_v37 = vmul.f32 %v2010_v62, %v579_v56  ;;  %v588_v58 = vadd.f32 1.0, %v587_v19 }
 0x1ee   :  { %v2081_v26 = vpop.eup %1287  ;;  %v550_v1 = vmul.f32 0.6931472, %v1286_v6  ;;  %1307 = vlog2.f32 %v629_v17  ;;  %v2109_v41 = vadd.f32 %v538_v7, %v2820_v3  ;;  %vm2116_vm7 = vcmp.lt.f32.partialorder %v590_v43, 0.0004427343 }
 0x1ef   :  { %v1290_v44 = vpop.eup %1289  ;;  %v647_v40 = vadd.f32 1.0, %v2081_v26  ;;  %1309 = vlog2.f32 %v638_v18  ;;  %v599_v8 = vand.u32 2147483647, %v2025_v35  ;;  %v605_v62 = vmul.f32 -0.5, %v2032_v31 }
 0x1f0   :  { %v2091_v25 = vpop.eup %1291  ;;  %v559_v6 = vmul.f32 0.6931472, %v1290_v44  ;;  %v556_v29 = vsel %vm2066_vm3, %v553_v33, %v550_v1  ;;  %v2127_v17 = vadd.f32 %v547_v27, %v2825_v39  ;;  %v681_v44 = vadd.f32 %v2109_v41, %v2104_v23 }
 0x1f1   :  { %v1294_v0 = vpop.eup %1293  ;;  %v656_v28 = vadd.f32 1.0, %v2091_v25  ;;  %v597_v33 = vadd.f32 1.0, %v596_v48  ;;  %1311 = vlog2.f32 %v647_v40  ;;  %v589_v56 = vmul.f32 %v2017_v13, %v588_v58 }
 0x1f2   :  { %v1296_v53 = vpop.eup %1295  ;;  %v568_v32 = vmul.f32 0.6931472, %v1294_v0  ;;  %v565_v15 = vsel %vm2077_vm4, %v562_v22, %v559_v6  ;;  %v614_v19 = vmul.f32 -0.5, %v2037_v61  ;;  %v2826_v43 = vmax.f32 %v1849_v2, 0.0 }
 0x1f3   :  { %v1298_v21 = vpop.eup %1297  ;;  %v577_v1 = vmul.f32 0.6931472, %v1296_v53  ;;  %v682_v11 = vadd.f32 %v681_v44, %v2127_v17  ;;  %v608_v22 = vand.u32 2147483647, %v2032_v31  ;;  %1313 = vlog2.f32 %v656_v28 }
 0x1f4   :  { %v1300_v7 = vpop.eup %1299  ;;  %v2137_v18 = vadd.f32 %v556_v29, %v2826_v43  ;;  %v574_v0 = vsel %vm2093_vm5, %v571_v5, %v568_v32  ;;  %v586_v27 = vmul.f32 0.6931472, %v1298_v21  ;;  %v606_v59 = vadd.f32 1.0, %v605_v62 }
 0x1f5   :  { %v1302_v53 = vpop.eup %1301  ;;  %v623_v48 = vmul.f32 -0.5, %v2053_v24  ;;  %v2827_v13 = vmax.f32 %v1863_v55, 0.0  ;;  %v583_v40 = vsel %vm2112_vm6, %v580_v37, %v577_v1  ;;  %v595_v3 = vmul.f32 0.6931472, %v1300_v7 }
 0x1f6   :  { %v683_v2 = vadd.f32 %v682_v11, %v2137_v18  ;;  %vm2151_vm8 = vcmp.lt.f32.partialorder %v599_v8, 0.0004427343  ;;  %v617_v5 = vand.u32 2147483647, %v2037_v61  ;;  %v1304_v58 = vpop.eup %1303  ;;  %v598_v29 = vmul.f32 %v2025_v35, %v597_v33 }
 0x1f7   :  { %v2146_v6 = vadd.f32 %v565_v15, %v2827_v13  ;;  %v615_v32 = vadd.f32 1.0, %v614_v19  ;;  %v2830_v55 = vmax.f32 %v1885_v63, 0.0  ;;  %v592_v37 = vsel %vm2116_vm7, %v589_v56, %v586_v27 }
 0x1f8   :  { %v604_v4 = vmul.f32 0.6931472, %v1302_v53  ;;  %vm2164_vm9 = vcmp.lt.f32.partialorder %v608_v22, 0.0004427343  ;;  %v632_v62 = vmul.f32 -0.5, %v2063_v38  ;;  %v607_v35 = vmul.f32 %v2032_v31, %v606_v59 }
 0x1f9   :  { %v2159_v28 = vadd.f32 %v574_v0, %v2830_v55  ;;  %v684_v21 = vadd.f32 %v683_v2, %v2146_v6  ;;  %v1306_v39 = vpop.eup %1305  ;;  %v624_v44 = vadd.f32 1.0, %v623_v48  ;;  %v2833_v63 = vmax.f32 %v1891_v36, 0.0 }
 0x1fa   :  { %v601_v10 = vsel %vm2151_vm8, %v598_v29, %v595_v3  ;;  %v613_v33 = vmul.f32 0.6931472, %v1304_v58  ;;  %vm2177_vm10 = vcmp.lt.f32.partialorder %v617_v5, 0.0004427343  ;;  %v641_v56 = vmul.f32 -0.5, %v2071_v9 }
 0x1fb   :  { %v2172_v15 = vadd.f32 %v583_v40, %v2833_v63  ;;  %v685_v1 = vadd.f32 %v684_v21, %v2159_v28  ;;  %v1308_v19 = vpop.eup %1307  ;;  %v616_v31 = vmul.f32 %v2037_v61, %v615_v32  ;;  %v626_v43 = vand.u32 2147483647, %v2053_v24 }
 0x1fc   :  { %v2836_v36 = vmax.f32 %v1899_v30, 0.0  ;;  %v610_v27 = vsel %vm2164_vm9, %v607_v35, %v604_v4  ;;  %v622_v22 = vmul.f32 0.6931472, %v1306_v39  ;;  %v633_v53 = vadd.f32 1.0, %v632_v62  ;;  %v1310_v48 = vpop.eup %1309 }
 0x1fd   :  { %v686_v0 = vadd.f32 %v685_v1, %v2172_v15  ;;  %v650_v59 = vmul.f32 -0.5, %v2081_v26  ;;  %v625_v13 = vmul.f32 %v2053_v24, %v624_v44  ;;  %v635_v61 = vand.u32 2147483647, %v2063_v38 }
 0x1fe   :  { %v2186_v11 = vadd.f32 %v592_v37, %v2836_v36  ;;  %v2837_v2 = vmax.f32 %v1908_v14, 0.0  ;;  %v619_v3 = vsel %vm2177_vm10, %v616_v31, %v613_v33  ;;  %v631_v54 = vmul.f32 0.6931472, %v1308_v19  ;;  %v1312_v29 = vpop.eup %1311 }
 0x1ff   :  { %v642_v5 = vadd.f32 1.0, %v641_v56  ;;  %v659_v58 = vmul.f32 -0.5, %v2091_v25  ;;  %vm2202_vm11 = vcmp.lt.f32.partialorder %v626_v43, 0.0004427343  ;;  %v644_v24 = vand.u32 2147483647, %v2071_v9 }
 0x200   :  { %v2196_v40 = vadd.f32 %v601_v10, %v2837_v2  ;;  %v687_v30 = vadd.f32 %v686_v0, %v2186_v11  ;;  %v2840_v14 = vmax.f32 %v1923_v34, 0.0  ;;  %v628_v37 = vsel %vm2202_vm11, %v625_v13, %v622_v22  ;;  %v1314_v39 = vpop.eup %1313 }
 0x201   :  { %v634_v4 = vmul.f32 %v2063_v38, %v633_v53  ;;  %v640_v8 = vmul.f32 0.6931472, %v1310_v48  ;;  %v651_v62 = vadd.f32 1.0, %v650_v59  ;;  %vm2215_vm12 = vcmp.lt.f32.partialorder %v635_v61, 0.0004427343 }
 0x202   :  { %v2209_v55 = vadd.f32 %v610_v27, %v2840_v14  ;;  %v688_v21 = vadd.f32 %v687_v30, %v2196_v40  ;;  %v653_v44 = vand.u32 2147483647, %v2081_v26  ;;  %v2843_v34 = vmax.f32 %v1952_v42, 0.0 }
 0x203   :  { %v637_v10 = vsel %vm2215_vm12, %v634_v4, %v631_v54  ;;  %v643_v33 = vmul.f32 %v2071_v9, %v642_v5  ;;  %v649_v38 = vmul.f32 0.6931472, %v1312_v29  ;;  %v660_v7 = vadd.f32 1.0, %v659_v58 }
 0x204   :  { %v675_v63 = vadd.f32 %v619_v3, %v2843_v34  ;;  %v689_v1 = vadd.f32 %v688_v21, %v2209_v55  ;;  %vm645_vm13 = vcmp.lt.f32.partialorder %v644_v24, 0.0004427343  ;;  %v662_v56 = vand.u32 2147483647, %v2091_v25 }
 0x205   :  { %v2844_v19 = vmax.f32 %v1958_v57, 0.0  ;;  %v646_v36 = vsel %vm645_vm13, %v643_v33, %v640_v8  ;;  %v652_v42 = vmul.f32 %v2081_v26, %v651_v62  ;;  %v658_v0 = vmul.f32 0.6931472, %v1314_v39 }
 0x206   :  { %v690_v43 = vadd.f32 %v689_v1, %v675_v63  ;;  %v454_v27 = vmax.f32 %v1973_v20, 0.0  ;;  %vm654_vm14 = vcmp.lt.f32.partialorder %v653_v44, 0.0004427343  ;;  %v2845_v22 = vmax.f32 %v1971_v12, 0.0 }
 0x207   :  { %v676_v31 = vadd.f32 %v628_v37, %v2844_v19  ;;  %v655_v59 = vsel %vm654_vm14, %v652_v42, %v649_v38  ;;  %v661_v48 = vmul.f32 %v2091_v25, %v660_v7  ;;  %v455_v13 = vmax.f32 %v1982_v16, 0.0 }
 0x208   :  { %v677_v53 = vadd.f32 %v637_v10, %v2845_v22  ;;  %vm663_vm15 = vcmp.lt.f32.partialorder %v662_v56, 0.0004427343  ;;  %v678_v57 = vadd.f32 %v646_v36, %v454_v27  ;;  %v456_v30 = vmax.f32 %v1987_v60, 0.0 }
 0x209   :  { %v691_v9 = vadd.f32 %v690_v43, %v676_v31  ;;  %v664_v2 = vsel %vm663_vm15, %v661_v48, %v658_v0  ;;  %v679_v26 = vadd.f32 %v655_v59, %v455_v13 }
 0x20a   :  { %v680_v54 = vadd.f32 %v664_v2, %v456_v30  ;;  %v2340_v30 = vld [vmem:[#allocation9] sm:$0xff] }
 0x20b   :  { %v692_v61 = vadd.f32 %v691_v9, %v677_v53 }
 0x20d   :  { %v693_v3 = vadd.f32 %v692_v61, %v678_v57 }
 0x20f   :  { %v694_v20 = vadd.f32 %v693_v3, %v679_v26  ;;  %v2346_v3 = vld [vmem:[#allocation9 + $0x8] sm:$0xff] }
 0x211   :  { %v695_v5 = vadd.f32 %v694_v20, %v680_v54  ;;  %v779_v20 = vrot.slane %v2340_v30, %v1608_v46 }
 0x213   :  { %696 = vadd.xlane.f32.xlu1 %v695_v5  ;;  %v783_v5 = vrot.slane %v2340_v30, %v1610_v47 }
 0x29c   :  { %v697_v12 = vpop.xlane.xlu1 %696 }
 0x29d   :  { %v699_v58 = vmul.f32 0.00048828125, %v697_v12  ;;  %v787_v12 = vrot.slane %v2340_v30, %v1616_v49 }
 0x29f   :  { %v2237_v29 = vsub.f32 %v2104_v23, %v699_v58  ;;  %v2240_v25 = vsub.f32 %v2109_v41, %v699_v58  ;;  %v2243_v16 = vsub.f32 %v2127_v17, %v699_v58  ;;  %v2250_v24 = vsub.f32 %v2137_v18, %v699_v58 }
 0x2a0   :  { %v2253_v14 = vsub.f32 %v2146_v6, %v699_v58  ;;  %v2258_v21 = vsub.f32 %v2159_v28, %v699_v58  ;;  %v2263_v4 = vsub.f32 %v2172_v15, %v699_v58  ;;  %v2268_v6 = vsub.f32 %v2186_v11, %v699_v58 }
 0x2a1   :  { %v716_v60 = vmul.f32 %v2237_v29, %v2237_v29  ;;  %v717_v32 = vmul.f32 %v2240_v25, %v2240_v25  ;;  %v718_v23 = vmul.f32 %v2243_v16, %v2243_v16  ;;  %v719_v17 = vmul.f32 %v2250_v24, %v2250_v24 }
 0x2a2   :  { %v720_v18 = vmul.f32 %v2253_v14, %v2253_v14  ;;  %v721_v62 = vmul.f32 %v2258_v21, %v2258_v21  ;;  %v2273_v28 = vsub.f32 %v2196_v40, %v699_v58  ;;  %v722_v35 = vmul.f32 %v2263_v4, %v2263_v4 }
 0x2a3   :  { %v732_v41 = vadd.f32 %v717_v32, %v716_v60  ;;  %v2278_v15 = vsub.f32 %v2209_v55, %v699_v58  ;;  %v723_v34 = vmul.f32 %v2268_v6, %v2268_v6  ;;  %v2282_v11 = vsub.f32 %v675_v63, %v699_v58  ;;  %v2362_v60 = vld [vmem:[#allocation10] sm:$0xff] }
 0x2a4   :  { %v724_v10 = vmul.f32 %v2273_v28, %v2273_v28  ;;  %v2286_v38 = vsub.f32 %v676_v31, %v699_v58  ;;  %v2290_v56 = vsub.f32 %v677_v53, %v699_v58  ;;  %v2294_v43 = vsub.f32 %v678_v57, %v699_v58 }
 0x2a5   :  { %v733_v37 = vadd.f32 %v732_v41, %v718_v23  ;;  %v725_v40 = vmul.f32 %v2278_v15, %v2278_v15  ;;  %v726_v55 = vmul.f32 %v2282_v11, %v2282_v11  ;;  %v2298_v42 = vsub.f32 %v679_v26, %v699_v58  ;;  %v2846_v41 = vld [vmem:[#allocation24_spill] sm:$0xff] }
 0x2a6   :  { %v727_v63 = vmul.f32 %v2286_v38, %v2286_v38  ;;  %v728_v31 = vmul.f32 %v2290_v56, %v2290_v56  ;;  %v2302_v27 = vsub.f32 %v680_v54, %v699_v58  ;;  %v729_v22 = vmul.f32 %v2294_v43, %v2294_v43 }
 0x2a7   :  { %v734_v8 = vadd.f32 %v733_v37, %v719_v17  ;;  %v730_v9 = vmul.f32 %v2298_v42, %v2298_v42  ;;  %v775_v54 = vrot.slane %v2340_v30, %v1606_v45  ;;  %v791_v58 = vrot.slane %v2340_v30, %v1618_v50 }
 0x2a8   :  { %v731_v48 = vmul.f32 %v2302_v27, %v2302_v27  ;;  %v795_v32 = vrot.slane %v2340_v30, %v1620_v51  ;;  %v799_v23 = vrot.slane %v2340_v30, %v1624_v52  ;;  %v803_v17 = vrot.slane %v2340_v30, %v2846_v41 }
 0x2a9   :  { %v735_v39 = vadd.f32 %v734_v8, %v720_v18  ;;  %v807_v37 = vrot.slane %v2346_v3, %v1606_v45  ;;  %v811_v18 = vrot.slane %v2346_v3, %v1608_v46  ;;  %v815_v8 = vrot.slane %v2346_v3, %v1610_v47 }
 0x2ab   :  { %v736_v44 = vadd.f32 %v735_v39, %v721_v62  ;;  %v819_v62 = vrot.slane %v2346_v3, %v1616_v49  ;;  %v823_v39 = vrot.slane %v2346_v3, %v1618_v50 }
 0x2ad   :  { %v737_v1 = vadd.f32 %v736_v44, %v722_v35  ;;  %v2384_v35 = vld [vmem:[#allocation10 + $0x8] sm:$0xff]  ;;  %v827_v44 = vrot.slane %v2346_v3, %v1620_v51 }
 0x2af   :  { %v738_v33 = vadd.f32 %v737_v1, %v723_v34  ;;  %v831_v34 = vrot.slane %v2346_v3, %v1624_v52  ;;  %v1107_v1 = vstv %s2416_s27 }
 0x2b1   :  { %v739_v7 = vadd.f32 %v738_v33, %v724_v10  ;;  %v875_v10 = vrot.slane %v2362_v60, %v1606_v45  ;;  %v879_v33 = vrot.slane %v2362_v60, %v1608_v46 }
 0x2b3   :  { %v740_v19 = vadd.f32 %v739_v7, %v725_v40  ;;  %v883_v40 = vrot.slane %v2362_v60, %v1610_v47  ;;  %v887_v7 = vrot.slane %v2362_v60, %v1616_v49 }
 0x2b5   :  { %v741_v36 = vadd.f32 %v740_v19, %v726_v55 }
 0x2b7   :  { %v742_v0 = vadd.f32 %v741_v36, %v727_v63  ;;  %v1049_v36 = vstv %s2338_s19 }
 0x2b9   :  { %v743_v53 = vadd.f32 %v742_v0, %v728_v31  ;;  %v1037_v31 = vstv %s2334_s2 }
 0x2bb   :  { %v744_v59 = vadd.f32 %v743_v53, %v729_v22  ;;  %v1025_v22 = vstv %s2330_s17  ;;  %v1089_v53 = vstv %s2386_s25 }
 0x2bd   :  { %v745_v13 = vadd.f32 %v744_v59, %v730_v9  ;;  %v1111_v59 = vstv %s2426_s28  ;;  %v1117_v9 = vstv %s2435_s3 }
 0x2bf   :  { %v746_v57 = vadd.f32 %v745_v13, %v731_v48 }
 0x2c1   :  { %747 = vadd.xlane.f32.xlu1 %v746_v57 }
 0x34a   :  { %v748_v61 = vpop.xlane.xlu1 %747 }
 0x34b   :  { %v749_v2 = vmul.f32 0.00048828125, %v748_v61 }
 0x34d   :  { %v750_v26 = vadd.f32 1e-05, %v749_v2 }
 0x34f   :  { %1315 = vrsqrt.f32 %v750_v26 }
 0x35c   :  { %v1316_v19 = vpop.eup %1315 }
 0x35d   :  { %v752_v57 = vmul.f32 %v1316_v19, %v2237_v29  ;;  %v753_v0 = vmul.f32 %v1316_v19, %v2240_v25  ;;  %v754_v61 = vmul.f32 %v1316_v19, %v2243_v16  ;;  %v755_v2 = vmul.f32 %v1316_v19, %v2250_v24 }
 0x35e   :  { %v756_v63 = vmul.f32 %v1316_v19, %v2253_v14  ;;  %v757_v26 = vmul.f32 %v1316_v19, %v2258_v21  ;;  %v758_v48 = vmul.f32 %v1316_v19, %v2263_v4  ;;  %v759_v55 = vmul.f32 %v1316_v19, %v2268_v6 }
 0x35f   :  { %v760_v13 = vmul.f32 %v1316_v19, %v2273_v28  ;;  %v761_v29 = vmul.f32 %v1316_v19, %v2278_v15  ;;  %v762_v25 = vmul.f32 %v1316_v19, %v2282_v11  ;;  %v763_v16 = vmul.f32 %v1316_v19, %v2286_v38 }
 0x360   :  { %v764_v24 = vmul.f32 %v1316_v19, %v2290_v56  ;;  %v765_v14 = vmul.f32 %v1316_v19, %v2294_v43  ;;  %v852_v21 = vmul.f32 %v775_v54, %v752_v57  ;;  %v853_v4 = vmul.f32 %v779_v20, %v753_v0 }
 0x361   :  { %v854_v6 = vmul.f32 %v783_v5, %v754_v61  ;;  %v855_v28 = vmul.f32 %v787_v12, %v755_v2  ;;  %v766_v15 = vmul.f32 %v1316_v19, %v2298_v42  ;;  %v767_v11 = vmul.f32 %v1316_v19, %v2302_v27 }
 0x362   :  { %v856_v38 = vmul.f32 %v791_v58, %v756_v63  ;;  %v857_v56 = vmul.f32 %v795_v32, %v757_v26  ;;  %v858_v43 = vmul.f32 %v799_v23, %v758_v48  ;;  %v859_v54 = vmul.f32 %v803_v17, %v759_v55 }
 0x363   :  { %v860_v42 = vmul.f32 %v807_v37, %v760_v13  ;;  %v861_v27 = vmul.f32 %v811_v18, %v761_v29  ;;  %v862_v20 = vmul.f32 %v815_v8, %v762_v25  ;;  %v863_v5 = vmul.f32 %v819_v62, %v763_v16 }
 0x364   :  { %v864_v30 = vmul.f32 %v823_v39, %v764_v24  ;;  %v865_v12 = vmul.f32 %v827_v44, %v765_v14  ;;  %v2524_v58 = vadd.f32 %v875_v10, %v852_v21  ;;  %v2529_v32 = vadd.f32 %v879_v33, %v853_v4 }
 0x365   :  { %v2534_v23 = vadd.f32 %v883_v40, %v854_v6  ;;  %v2539_v17 = vadd.f32 %v887_v7, %v855_v28  ;;  %v866_v37 = vmul.f32 %v831_v34, %v766_v15  ;;  %v2847_v18 = vrot.slane %v2346_v3, %v2846_v41 }
 0x366   :  { %v2848_v62 = vrot.slane %v2362_v60, %v1618_v50  ;;  %v2849_v44 = vrot.slane %v2362_v60, %v1620_v51  ;;  %v2850_v33 = vrot.slane %v2362_v60, %v1624_v52  ;;  %v2851_v3 = vrot.slane %v2362_v60, %v2846_v41 }
 0x367   :  { %v867_v8 = vmul.f32 %v2847_v18, %v767_v11  ;;  %v2852_v7 = vrot.slane %v2384_v35, %v1606_v45  ;;  %v2853_v19 = vrot.slane %v2384_v35, %v1608_v46  ;;  %v2854_v0 = vrot.slane %v2384_v35, %v1610_v47 }
 0x368   :  { %v2550_v39 = vadd.f32 %v2848_v62, %v856_v38  ;;  %v2555_v10 = vadd.f32 %v2849_v44, %v857_v56  ;;  %v2560_v34 = vadd.f32 %v2850_v33, %v858_v43  ;;  %v2565_v40 = vadd.f32 %v2851_v3, %v859_v54 }
 0x369   :  { %v2570_v55 = vadd.f32 %v2852_v7, %v860_v42  ;;  %v2575_v63 = vadd.f32 %v2853_v19, %v861_v27  ;;  %v2580_v48 = vadd.f32 %v2854_v0, %v862_v20  ;;  %v2855_v60 = vrot.slane %v2384_v35, %v1616_v49 }
 0x36a   :  { %v2856_v45 = vrot.slane %v2384_v35, %v1618_v50  ;;  %v2857_v57 = vrot.slane %v2384_v35, %v1620_v51  ;;  %v2858_v61 = vstv %s2310_s8  ;;  %v2860_v29 = vstv %s2312_s9  ;;  %s2753_s8 = sld [smem:[#allocation12 + $0x1e]] }
 0x36b   :  { %v2585_v13 = vadd.f32 %v2855_v60, %v863_v5  ;;  %v970_v2 = vmul.f32 %v2858_v61, %v2524_v58  ;;  %v2859_v49 = vmov %v2858_v61  ;;  %v974_v25 = vmul.f32 %v2860_v29, %v2534_v23  ;;  %s2773_s9 = sld [smem:[#allocation12 + $0x1f]] }
 0x36c   :  { %v2590_v46 = vadd.f32 %v2856_v45, %v864_v30  ;;  %v2595_v47 = vadd.f32 %v2857_v57, %v865_v12  ;;  %v971_v26 = vmul.f32 %v2859_v49, %v2529_v32  ;;  %v2861_v50 = vmov %v2860_v29 }
 0x36d   :  { %v975_v16 = vmul.f32 %v2861_v50, %v2539_v17  ;;  %v2862_v51 = vrot.slane %v2384_v35, %v1624_v52  ;;  %v2863_v14 = vrot.slane %v2384_v35, %v2846_v41  ;;  %v2864_v4 = vstv %s2314_s10  ;;  %s1484_s10 = smov [#allocation15]  }
 0x36e   :  { %v980_v6 = vmul.f32 %v2864_v4, %v2550_v39  ;;  %v2865_v28 = vmov %v2864_v4  ;;  %v976_v11 = vadd.f32 %v974_v25, %v970_v2  ;;  %v2866_v38 = vstv %s2316_s11  ;;  %s1166_s11 = sshll.u32 %s1484_s10, 4  ;;  %s1167_s11 = int_to_ptr.vmem [resolvable:$true] %s1166_s11 }
 0x36f   :  { %v2612_v24 = vadd.f32 %v2862_v51, %v866_v37  ;;  %v2617_v21 = vadd.f32 %v2863_v14, %v867_v8  ;;  %v981_v15 = vmul.f32 %v2865_v28, %v2555_v10  ;;  %v977_v52 = vadd.f32 %v975_v16, %v971_v26  ;;  %p1446_p8 = scmp.lt.s32.totalorder %s1167_s11, %s1167_s11 }
 0x370   :  { %v986_v56 = vmul.f32 %v2866_v38, %v2560_v34  ;;  %v2867_v43 = vmov %v2866_v38  ;;  %v2868_v35 = vstv %s2318_s12  ;;  %v2870_v20 = vstv %s2320_s13  ;;  %s1441_s12 = scalar_lea.vmem %s1167_s11, 1024 }
 0x371   :  { %v987_v41 = vmul.f32 %v2867_v43, %v2565_v40  ;;  %v992_v54 = vmul.f32 %v2868_v35, %v2570_v55  ;;  %v2869_v42 = vmov %v2868_v35  ;;  %v998_v5 = vmul.f32 %v2870_v20, %v2580_v48  ;;  %p1442_p7 = scmp.ne.s32.totalorder %s1167_s11, %s1441_s12  ;;  %p1447_p9 = scmp.lt.s32.totalorder %s1441_s12, %s1441_s12 }
 0x372   :  { %v993_v27 = vmul.f32 %v2869_v42, %v2575_v63  ;;  %v2871_v30 = vmov %v2870_v20  ;;  %v982_v37 = vadd.f32 %v980_v6, %v976_v11  ;;  %v983_v18 = vadd.f32 %v981_v15, %v977_v52 }
 0x373   :  { %v999_v12 = vmul.f32 %v2871_v30, %v2585_v13  ;;  %v2872_v8 = vstv %s2322_s14  ;;  %v2874_v3 = vstv %s2326_s1  ;;  %v2876_v60 = vstv %s2328_s16  ;;  %p1448_p10 = por %p1447_p9, %p1446_p8 }
 0x374   :  { %v1004_v62 = vmul.f32 %v2872_v8, %v2590_v46  ;;  %v2873_v44 = vmov %v2872_v8  ;;  %v1016_v7 = vmul.f32 %v2874_v3, %v2524_v58  ;;  %v2875_v19 = vmov %v2874_v3 }
 0x375   :  { %v1005_v33 = vmul.f32 %v2873_v44, %v2595_v47  ;;  %v1017_v0 = vmul.f32 %v2875_v19, %v2529_v32  ;;  %v1020_v45 = vmul.f32 %v2876_v60, %v2534_v23  ;;  %v2877_v57 = vmov %v2876_v60  ;;  %p1449_p11 = pnand %p1448_p10, %p1442_p7 }
 0x376   :  { %v1021_v61 = vmul.f32 %v2877_v57, %v2539_v17  ;;  %v988_v2 = vadd.f32 %v986_v56, %v982_v37  ;;  %v989_v49 = vadd.f32 %v987_v41, %v983_v18  ;;  %v2878_v26 = vstv %s2324_s15 }
 0x377   :  { %v1010_v29 = vmul.f32 %v2878_v26, %v2612_v24  ;;  %v2879_v25 = vmov %v2878_v26  ;;  %v1022_v16 = vadd.f32 %v1020_v45, %v1016_v7  ;;  %v1026_v14 = vmul.f32 %v1025_v22, %v2550_v39 }
 0x378   :  { %v1011_v50 = vmul.f32 %v2879_v25, %v2617_v21  ;;  %v1023_v51 = vadd.f32 %v1021_v61, %v1017_v0  ;;  %v1027_v4 = vmul.f32 %v1025_v22, %v2555_v10  ;;  %v994_v6 = vadd.f32 %v992_v54, %v988_v2 }
 0x379   :  { %v995_v28 = vadd.f32 %v993_v27, %v989_v49  ;;  %v2880_v15 = vstv %s2332_s4  ;;  %v1028_v56 = vadd.f32 %v1026_v14, %v1022_v16  ;;  %v1038_v41 = vmul.f32 %v1037_v31, %v2570_v55 }
 0x37a   :  { %v1032_v11 = vmul.f32 %v2880_v15, %v2560_v34  ;;  %v2881_v52 = vmov %v2880_v15  ;;  %v1029_v43 = vadd.f32 %v1027_v4, %v1023_v51  ;;  %v1039_v22 = vmul.f32 %v1037_v31, %v2575_v63 }
 0x37b   :  { %v1033_v38 = vmul.f32 %v2881_v52, %v2565_v40  ;;  %v1000_v35 = vadd.f32 %v998_v5, %v994_v6  ;;  %v1001_v54 = vadd.f32 %v999_v12, %v995_v28  ;;  %v2882_v42 = vstv %s2336_s18 }
 0x37c   :  { %v1044_v27 = vmul.f32 %v2882_v42, %v2580_v48  ;;  %v2883_v20 = vmov %v2882_v42  ;;  %v1034_v37 = vadd.f32 %v1032_v11, %v1028_v56  ;;  %v1050_v31 = vmul.f32 %v1049_v36, %v2590_v46 }
 0x37d   :  { %v1045_v30 = vmul.f32 %v2883_v20, %v2585_v13  ;;  %v1035_v18 = vadd.f32 %v1033_v38, %v1029_v43  ;;  %v1051_v5 = vmul.f32 %v1049_v36, %v2595_v47  ;;  %v1006_v8 = vadd.f32 %v1004_v62, %v1000_v35 }
 0x37e   :  { %v1007_v12 = vadd.f32 %v1005_v33, %v1001_v54  ;;  %v2884_v44 = vstv %s2344_s21  ;;  %v1040_v0 = vadd.f32 %v1038_v41, %v1034_v37  ;;  %v2886_v45 = vstv %s2348_s22 }
 0x37f   :  { %v1062_v3 = vmul.f32 %v2884_v44, %v2524_v58  ;;  %v2885_v7 = vmov %v2884_v44  ;;  %v1041_v60 = vadd.f32 %v1039_v22, %v1035_v18  ;;  %v1066_v57 = vmul.f32 %v2886_v45, %v2534_v23 }
 0x380   :  { %v1063_v19 = vmul.f32 %v2885_v7, %v2529_v32  ;;  %v2887_v61 = vmov %v2886_v45  ;;  %v1012_v62 = vadd.f32 %v1010_v29, %v1006_v8  ;;  %v1013_v2 = vadd.f32 %v1011_v50, %v1007_v12 }
 0x381   :  { %v1067_v36 = vmul.f32 %v2887_v61, %v2539_v17  ;;  %v2888_v33 = vstv %s2354_s23  ;;  %v1046_v16 = vadd.f32 %v1044_v27, %v1040_v0  ;;  %v1047_v51 = vadd.f32 %v1045_v30, %v1041_v60 }
 0x382   :  { %v1072_v49 = vmul.f32 %v2888_v33, %v2550_v39  ;;  %v2889_v26 = vmov %v2888_v33  ;;  %v1068_v14 = vadd.f32 %v1066_v57, %v1062_v3  ;;  %v2890_v6 = vstv %s2342_s20  ;;  %1152 = vst [vmem:[#allocation15] sm:$0xff] %v1012_v62  ;;  %1153 = vst [vmem:[#allocation15 + $0x8] sm:$0xff] %v1013_v2 }
 0x383   :  { %v1073_v25 = vmul.f32 %v2889_v26, %v2555_v10  ;;  %v1069_v4 = vadd.f32 %v1067_v36, %v1063_v19  ;;  %v1056_v28 = vmul.f32 %v2890_v6, %v2612_v24  ;;  %v2891_v29 = vmov %v2890_v6 }
 0x384   :  { %v1057_v50 = vmul.f32 %v2891_v29, %v2617_v21  ;;  %v2892_v15 = vstv %s2364_s0  ;;  %v1052_v56 = vadd.f32 %v1050_v31, %v1046_v16  ;;  %v1053_v43 = vadd.f32 %v1051_v5, %v1047_v51 }
 0x385   :  { %v1078_v11 = vmul.f32 %v2892_v15, %v2560_v34  ;;  %v2893_v52 = vmov %v2892_v15  ;;  %v1074_v41 = vadd.f32 %v1072_v49, %v1068_v14  ;;  %v1075_v22 = vadd.f32 %v1073_v25, %v1069_v4 }
 0x386   :  { %v1079_v38 = vmul.f32 %v2893_v52, %v2565_v40  ;;  %v2894_v35 = vstv %s2374_s24  ;;  %v1123_v20 = vstv %s2685_s29  ;;  %v1129_v30 = vstv %s2693_s6 }
 0x387   :  { %v1084_v54 = vmul.f32 %v2894_v35, %v2570_v55  ;;  %v2895_v42 = vmov %v2894_v35  ;;  %v1058_v37 = vadd.f32 %v1056_v28, %v1052_v56  ;;  %v1059_v18 = vadd.f32 %v1057_v50, %v1053_v43 }
 0x388   :  { %v1085_v27 = vmul.f32 %v2895_v42, %v2575_v63  ;;  %v1080_v31 = vadd.f32 %v1078_v11, %v1074_v41  ;;  %v1081_v5 = vadd.f32 %v1079_v38, %v1075_v22  ;;  %v1090_v8 = vmul.f32 %v1089_v53, %v2580_v48 }
 0x389   :  { %v1091_v12 = vmul.f32 %v1089_v53, %v2585_v13  ;;  %v1108_v44 = vmul.f32 %v1107_v1, %v2524_v58  ;;  %v1109_v3 = vmul.f32 %v1107_v1, %v2529_v32  ;;  %v1112_v0 = vmul.f32 %v1111_v59, %v2534_v23  ;;  %1154 = vst [vmem:[#allocation15 + $0x10] sm:$0xff] %v1058_v37 }
 0x38a   :  { %v1086_v7 = vadd.f32 %v1084_v54, %v1080_v31  ;;  %v1087_v19 = vadd.f32 %v1085_v27, %v1081_v5  ;;  %v1113_v60 = vmul.f32 %v1111_v59, %v2539_v17  ;;  %1155 = vst [vmem:[#allocation15 + $0x18] sm:$0xff] %v1059_v18  ;;  %v2896_v53 = vstv %s2396_s5 }
 0x38b   :  { %v1096_v58 = vmul.f32 %v2896_v53, %v2590_v46  ;;  %v2897_v45 = vmov %v2896_v53  ;;  %v1118_v32 = vmul.f32 %v1117_v9, %v2550_v39  ;;  %v1119_v57 = vmul.f32 %v1117_v9, %v2555_v10 }
 0x38c   :  { %v1097_v1 = vmul.f32 %v2897_v45, %v2595_v47  ;;  %v1092_v23 = vadd.f32 %v1090_v8, %v1086_v7  ;;  %v1093_v61 = vadd.f32 %v1091_v12, %v1087_v19  ;;  %v1114_v59 = vadd.f32 %v1112_v0, %v1108_v44 }
 0x38d   :  { %v1115_v17 = vadd.f32 %v1113_v60, %v1109_v3  ;;  %v2898_v36 = vstv %s2406_s26  ;;  %v1124_v49 = vmul.f32 %v1123_v20, %v2560_v34  ;;  %v1125_v39 = vmul.f32 %v1123_v20, %v2565_v40 }
 0x38e   :  { %v1102_v62 = vmul.f32 %v2898_v36, %v2612_v24  ;;  %v2899_v2 = vmov %v2898_v36  ;;  %v1098_v26 = vadd.f32 %v1096_v58, %v1092_v23  ;;  %v1099_v9 = vadd.f32 %v1097_v1, %v1093_v61 }
 0x38f   :  { %v1103_v33 = vmul.f32 %v2899_v2, %v2617_v21  ;;  %v1120_v10 = vadd.f32 %v1118_v32, %v1114_v59  ;;  %v1121_v25 = vadd.f32 %v1119_v57, %v1115_v17  ;;  %v1130_v16 = vmul.f32 %v1129_v30, %v2570_v55 }
 0x390   :  { %v1131_v51 = vmul.f32 %v1129_v30, %v2575_v63  ;;  %v1135_v14 = vstv %s2739_s30  ;;  %v1104_v4 = vadd.f32 %v1102_v62, %v1098_v26  ;;  %v1141_v50 = vstv %s2753_s8 }
 0x391   :  { %v1105_v6 = vadd.f32 %v1103_v33, %v1099_v9  ;;  %v1126_v28 = vadd.f32 %v1124_v49, %v1120_v10  ;;  %v1127_v29 = vadd.f32 %v1125_v39, %v1121_v25  ;;  %v1136_v34 = vmul.f32 %v1135_v14, %v2580_v48 }
 0x392   :  { %v1137_v40 = vmul.f32 %v1135_v14, %v2585_v13  ;;  %1156 = vst [vmem:[#allocation15 + $0x20] sm:$0xff] %v1104_v4  ;;  %v1147_v52 = vstv %s2773_s9  ;;  %v1142_v55 = vmul.f32 %v1141_v50, %v2590_v46  ;;  %v1143_v63 = vmul.f32 %v1141_v50, %v2595_v47 }
 0x393   :  { %v1132_v15 = vadd.f32 %v1130_v16, %v1126_v28  ;;  %v1133_v11 = vadd.f32 %v1131_v51, %v1127_v29  ;;  %1157 = vst [vmem:[#allocation15 + $0x28] sm:$0xff] %v1105_v6  ;;  %v1148_v22 = vmul.f32 %v1147_v52, %v2612_v24  ;;  %v1149_v35 = vmul.f32 %v1147_v52, %v2617_v21 }
 0x395   :  { %v1138_v38 = vadd.f32 %v1136_v34, %v1132_v15  ;;  %v1139_v56 = vadd.f32 %v1137_v40, %v1133_v11 }
 0x397   :  { %v1144_v43 = vadd.f32 %v1142_v55, %v1138_v38  ;;  %v1145_v41 = vadd.f32 %v1143_v63, %v1139_v56 }
 0x399   :  { %v1150_v48 = vadd.f32 %v1148_v22, %v1144_v43  ;;  %v1151_v54 = vadd.f32 %v1149_v35, %v1145_v41 }
 0x39b   :  { %1158 = vst [vmem:[#allocation15 + $0x30] sm:$0xff] %v1150_v48  ;;  %1159 = vst [vmem:[#allocation15 + $0x38] sm:$0xff] %v1151_v54 }
 0x39c   :  { %1452 = shalt.err (!%p1449_p11)
}
 0x39d   :  { %1169 = dma.vmem_to_hbm [thread:$0]  %s1167_s11, 1024, %s2804_s7, [#allocation4]  }
 0x39e   :  { %1475 = dma.done.wait [#allocation4], 1024  }
 0x39f   :  { %1476 = vsyncadd [#allocation4], 4294966272 }
 0x3a0   :  { %1173 = vsyncpa [#allocation3], 1 }
 0x3a1   :  { %1174 = vsyncpa [#allocation7], 1 }
 0x3a2   :  { %1175 = vsyncpa [#allocation11], 1 }
 0x3a3   :  { %1176 = vsyncpa [#allocation4], 1 }
 0x3a4   :  { %1177 = vsyncpa [#allocation5], 1 }
 0x3a5   :  { %1178 = vsyncpa [#allocation13], 1 }

</bundles_post_ra>
